<compile_context>
chip_gen: v6e
topology: v6e:2x2x1
jax: 0.10.0
libtpu: 0.0.40
codegen_flags: <defaults>
</compile_context>

<pallas_src>
import jax
import jax.numpy as jnp
from jax import lax
from jax.experimental import pallas as pl
from jax.experimental.pallas import tpu as pltpu


TILE_B = 128  # batch rows per grid block (fills the MXU row dimension)


def ngram_lm_kernel(ids_ref, m_ref, b1_ref, w2_ref, b2_ref, o_ref):
    # ids: (TB, C) int32      m:  (C*V, H) bf16   (embedding folded into W1)
    # b1:  (1, H)  f32        w2: (H, V)   bf16   b2: (1, V) f32
    # o:   (TB, V) f32
    tb, c_ctx = ids_ref.shape
    v = w2_ref.shape[1]

    ids = ids_ref[...]                                        # (TB, C) int32
    vocab_iota = lax.broadcasted_iota(jnp.int32, (tb, v), 1)  # (TB, V)

    # Lane-concatenated one-hot selector: column c*V + ids[:, c] is 1.
    onehots = [(vocab_iota == ids[:, c:c + 1]).astype(m_ref.dtype)
               for c in range(c_ctx)]                         # C x (TB, V) bf16
    onehot = jnp.concatenate(onehots, axis=-1)                # (TB, C*V) bf16

    # Fused embedding lookup + linear1: one K=C*V MXU matmul, f32 accumulation.
    h = jnp.dot(onehot, m_ref[...], preferred_element_type=jnp.float32)  # (TB, H)
    h = jnp.maximum(h + b1_ref[...], 0.0)                     # bias + ReLU, f32

    # linear2 (bf16 MXU path, f32 accumulation) + bias.
    logits = jnp.dot(h.astype(w2_ref.dtype), w2_ref[...],
                     preferred_element_type=jnp.float32) + b2_ref[...]   # (TB, V)

    # log_softmax over the vocab (lane) axis, in f32.
    m_max = jnp.max(logits, axis=-1, keepdims=True)
    shifted = logits - m_max
    lse = jnp.log(jnp.sum(jnp.exp(shifted), axis=-1, keepdims=True))
    o_ref[...] = (shifted - lse).astype(o_ref.dtype)


def _folded_weight(emb_table, w1, param_dtype):
    """M[c*V:(c+1)*V, :] = emb @ W1.T[c*E:(c+1)*E, :], computed in f32, cast once."""
    hidden, ce = w1.shape
    vocab, emb_dim = emb_table.shape
    context = ce // emb_dim
    w1_t = w1.T.astype(jnp.float32)                           # (C*E, H)
    emb_f = emb_table.astype(jnp.float32)                     # (V, E)
    blocks = [emb_f @ w1_t[c * emb_dim:(c + 1) * emb_dim, :]  # (V, H) each
              for c in range(context)]
    return jnp.concatenate(blocks, axis=0).astype(param_dtype)  # (C*V, H)


def prepare_params(emb_table, w1, b1, w2, b2, param_dtype=jnp.bfloat16):
    """One-time re-layout: fold emb into W1, transpose to (in, out), cast."""
    hidden = w1.shape[0]
    vocab = w2.shape[0]
    return {
        "m": _folded_weight(emb_table, w1, param_dtype),      # (C*V, H) bf16
        "b1": b1.reshape(1, hidden).astype(jnp.float32),      # (1, H)  f32
        "w2": w2.T.astype(param_dtype),                       # (H, V)  bf16
        "b2": b2.reshape(1, vocab).astype(jnp.float32),       # (1, V)  f32
    }


def _vmem_limit_bytes(tb, c_ctx, v, h):
    ids_b = tb * 128 * 4                     # lane-padded int32 ids block
    m_b = c_ctx * v * h * 2
    b1_b = 8 * h * 4
    w2_b = h * v * 2
    b2_b = 8 * v * 4
    out_b = tb * v * 4
    scratch = tb * c_ctx * v * 2 + tb * v * 4 + tb * h * 4    # onehot/logits/h
    total = 2 * (ids_b + m_b + b1_b + w2_b + b2_b + out_b) + scratch + (4 << 20)
    return int(min(max(total, 16 << 20), 64 << 20))


@jax.jit
def _forward(token_ids, m, b1, w2, b2):
    batch, c_ctx = token_ids.shape
    cv, hidden = m.shape
    vocab = w2.shape[1]
    tb = TILE_B
    grid = (batch // tb,)
    return pl.pallas_call(
        ngram_lm_kernel,
        out_shape=jax.ShapeDtypeStruct((batch, vocab), jnp.float32),
        grid=grid,
        in_specs=[
            pl.BlockSpec((tb, c_ctx), lambda i: (i, 0)),      # ids, batch-blocked
            pl.BlockSpec((cv, hidden), lambda i: (0, 0)),     # folded W, resident
            pl.BlockSpec((1, hidden), lambda i: (0, 0)),
            pl.BlockSpec((hidden, vocab), lambda i: (0, 0)),
            pl.BlockSpec((1, vocab), lambda i: (0, 0)),
        ],
        out_specs=pl.BlockSpec((tb, vocab), lambda i: (i, 0)),
        compiler_params=pltpu.CompilerParams(
            dimension_semantics=("parallel",),                # v7x: 2 TCs
            vmem_limit_bytes=_vmem_limit_bytes(tb, cv // vocab, vocab, hidden)),
    )(token_ids, m, b1, w2, b2)


def ngram_lm_forward(token_ids, params):
    """token_ids: (C,) or (B, C) int32 -> (B, vocab) log-probs.

    (C,) input reproduces the original module's (1, vocab) output. The batch
    is padded up to a multiple of TILE_B; pad rows are computed and discarded.
    """
    token_ids = jnp.atleast_2d(jnp.asarray(token_ids, jnp.int32))
    b = token_ids.shape[0]
    b_pad = ((b + TILE_B - 1) // TILE_B) * TILE_B
    if b_pad != b:
        token_ids = jnp.pad(token_ids, ((0, b_pad - b), (0, 0)))
    out = _forward(token_ids, params["m"], params["b1"],
                   params["w2"], params["b2"])
    return out[:b]


def _reference(token_ids, emb_table, w1, b1, w2, b2, param_dtype=jnp.bfloat16):
    """Pure-JAX reference mirroring the kernel's precision policy exactly
    (bf16 folded weights / bf16 w2, f32 accumulation, f32 log-softmax)."""
    token_ids = jnp.atleast_2d(jnp.asarray(token_ids, jnp.int32))
    vocab, emb_dim = emb_table.shape
    context = w1.shape[1] // emb_dim
    m = _folded_weight(emb_table, w1, param_dtype)            # (C*V, H) bf16
    h = sum(jnp.take(m[c * vocab:(c + 1) * vocab], token_ids[:, c],
                     axis=0).astype(jnp.float32)
            for c in range(context))                          # (B, H) f32
    h = jnp.maximum(h + b1.astype(jnp.float32), 0.0)
    h = h.astype(param_dtype).astype(jnp.float32)             # kernel feeds bf16
    w2f = w2.astype(param_dtype).astype(jnp.float32)
    logits = h @ w2f.T + b2.astype(jnp.float32)
    return jax.nn.log_softmax(logits, axis=-1)


if __name__ == "__main__":
    # Small shapes consistent with the module spec.
    vocab_size = 128
    embedding_dim = 32
    context_size = 8
    hidden = 256
    batch = 256   # 2 grid blocks of 128 rows -> fills MXU rows, both v7x TCs

    key = jax.random.PRNGKey(0)
    k_emb, k_w1, k_b1, k_w2, k_b2, k_in = jax.random.split(key, 6)

    emb_table = jax.random.normal(k_emb, (vocab_size, embedding_dim), jnp.float32)
    w1 = jax.random.normal(k_w1, (hidden, context_size * embedding_dim),
                           jnp.float32) * 0.05
    b1 = jax.random.normal(k_b1, (hidden,), jnp.float32) * 0.05
    w2 = jax.random.normal(k_w2, (vocab_size, hidden), jnp.float32) * 0.05
    b2 = jax.random.normal(k_b2, (vocab_size,), jnp.float32) * 0.05

    token_ids = jax.random.randint(k_in, (batch, context_size), 0, vocab_size,
                                   jnp.int32)

    # One-time parameter prep (embedding fold / transposes / casts hoisted out
    # of the per-call path).
    params = prepare_params(emb_table, w1, b1, w2, b2)

    # Batched forward.
    log_probs = ngram_lm_forward(token_ids, params)
    log_probs = jax.block_until_ready(log_probs)

    ref = _reference(token_ids, emb_table, w1, b1, w2, b2)
    assert log_probs.shape == (batch, vocab_size)
    assert jnp.allclose(log_probs, ref, atol=2e-3, rtol=2e-3), (
        "mismatch vs reference, max abs err "
        f"{float(jnp.max(jnp.abs(log_probs - ref)))}")

    # Original module interface: single (context_size,) id vector -> (1, vocab).
    single = ngram_lm_forward(token_ids[0], params)
    single = jax.block_until_ready(single)
    assert single.shape == (1, vocab_size)
    assert jnp.allclose(single, ref[0:1], atol=2e-3, rtol=2e-3)

    print("KERNEL_OK")
</pallas_src>

<mosaic_0001>
module attributes {stable_mosaic.version = 11 : i64} {
  func.func @ngram_lm_kernel(%arg0: i32, %arg1: memref<128x8xi32, #tpu.memory_space<vmem>>, %arg2: memref<1024x256xbf16, #tpu.memory_space<vmem>>, %arg3: memref<1x256xf32, #tpu.memory_space<vmem>>, %arg4: memref<256x128xbf16, #tpu.memory_space<vmem>>, %arg5: memref<1x128xf32, #tpu.memory_space<vmem>>, %arg6: memref<128x128xf32, #tpu.memory_space<vmem>>) attributes {dimension_semantics = [#tpu.dimension_semantics<parallel>], iteration_bounds = array<i64: 2>, scalar_prefetch = 0 : i64, scratch_operands = 0 : i64, tpu.core_type = #tpu.core_type<tc>, window_params = [{transform_indices = @transform_0, window_bounds = array<i64: 128, 8>}, {pipeline_mode = #tpu.pipeline_mode<synchronous>, transform_indices = @transform_1, window_bounds = array<i64: 1024, 256>}, {pipeline_mode = #tpu.pipeline_mode<synchronous>, transform_indices = @transform_2, window_bounds = array<i64: 1, 256>}, {pipeline_mode = #tpu.pipeline_mode<synchronous>, transform_indices = @transform_3, window_bounds = array<i64: 256, 128>}, {pipeline_mode = #tpu.pipeline_mode<synchronous>, transform_indices = @transform_4, window_bounds = array<i64: 1, 128>}, {transform_indices = @transform_5, window_bounds = array<i64: 128, 128>}]} {
    %c0 = arith.constant 0 : index
    %c0_0 = arith.constant 0 : index
    %0 = vector.load %arg1[%c0, %c0_0] : memref<128x8xi32, #tpu.memory_space<vmem>>, vector<128x8xi32>
    %1 = tpu.iota {dimensions = array<i32: 1>} : vector<128x128xi32>
    %2 = vector.extract_strided_slice %0 {offsets = [0, 0], sizes = [128, 1], strides = [1, 1]} : vector<128x8xi32> to vector<128x1xi32>
    %3 = vector.broadcast %2 : vector<128x1xi32> to vector<128x128xi32>
    %4 = arith.cmpi eq, %1, %3 : vector<128x128xi32>
    %5 = arith.extui %4 : vector<128x128xi1> to vector<128x128xi32>
    %6 = arith.sitofp %5 : vector<128x128xi32> to vector<128x128xf32>
    %7 = arith.truncf %6 : vector<128x128xf32> to vector<128x128xbf16>
    %8 = vector.extract_strided_slice %0 {offsets = [0, 1], sizes = [128, 1], strides = [1, 1]} : vector<128x8xi32> to vector<128x1xi32>
    %9 = vector.broadcast %8 : vector<128x1xi32> to vector<128x128xi32>
    %10 = arith.cmpi eq, %1, %9 : vector<128x128xi32>
    %11 = arith.extui %10 : vector<128x128xi1> to vector<128x128xi32>
    %12 = arith.sitofp %11 : vector<128x128xi32> to vector<128x128xf32>
    %13 = arith.truncf %12 : vector<128x128xf32> to vector<128x128xbf16>
    %14 = vector.extract_strided_slice %0 {offsets = [0, 2], sizes = [128, 1], strides = [1, 1]} : vector<128x8xi32> to vector<128x1xi32>
    %15 = vector.broadcast %14 : vector<128x1xi32> to vector<128x128xi32>
    %16 = arith.cmpi eq, %1, %15 : vector<128x128xi32>
    %17 = arith.extui %16 : vector<128x128xi1> to vector<128x128xi32>
    %18 = arith.sitofp %17 : vector<128x128xi32> to vector<128x128xf32>
    %19 = arith.truncf %18 : vector<128x128xf32> to vector<128x128xbf16>
    %20 = vector.extract_strided_slice %0 {offsets = [0, 3], sizes = [128, 1], strides = [1, 1]} : vector<128x8xi32> to vector<128x1xi32>
    %21 = vector.broadcast %20 : vector<128x1xi32> to vector<128x128xi32>
    %22 = arith.cmpi eq, %1, %21 : vector<128x128xi32>
    %23 = arith.extui %22 : vector<128x128xi1> to vector<128x128xi32>
    %24 = arith.sitofp %23 : vector<128x128xi32> to vector<128x128xf32>
    %25 = arith.truncf %24 : vector<128x128xf32> to vector<128x128xbf16>
    %26 = vector.extract_strided_slice %0 {offsets = [0, 4], sizes = [128, 1], strides = [1, 1]} : vector<128x8xi32> to vector<128x1xi32>
    %27 = vector.broadcast %26 : vector<128x1xi32> to vector<128x128xi32>
    %28 = arith.cmpi eq, %1, %27 : vector<128x128xi32>
    %29 = arith.extui %28 : vector<128x128xi1> to vector<128x128xi32>
    %30 = arith.sitofp %29 : vector<128x128xi32> to vector<128x128xf32>
    %31 = arith.truncf %30 : vector<128x128xf32> to vector<128x128xbf16>
    %32 = vector.extract_strided_slice %0 {offsets = [0, 5], sizes = [128, 1], strides = [1, 1]} : vector<128x8xi32> to vector<128x1xi32>
    %33 = vector.broadcast %32 : vector<128x1xi32> to vector<128x128xi32>
    %34 = arith.cmpi eq, %1, %33 : vector<128x128xi32>
    %35 = arith.extui %34 : vector<128x128xi1> to vector<128x128xi32>
    %36 = arith.sitofp %35 : vector<128x128xi32> to vector<128x128xf32>
    %37 = arith.truncf %36 : vector<128x128xf32> to vector<128x128xbf16>
    %38 = vector.extract_strided_slice %0 {offsets = [0, 6], sizes = [128, 1], strides = [1, 1]} : vector<128x8xi32> to vector<128x1xi32>
    %39 = vector.broadcast %38 : vector<128x1xi32> to vector<128x128xi32>
    %40 = arith.cmpi eq, %1, %39 : vector<128x128xi32>
    %41 = arith.extui %40 : vector<128x128xi1> to vector<128x128xi32>
    %42 = arith.sitofp %41 : vector<128x128xi32> to vector<128x128xf32>
    %43 = arith.truncf %42 : vector<128x128xf32> to vector<128x128xbf16>
    %44 = vector.extract_strided_slice %0 {offsets = [0, 7], sizes = [128, 1], strides = [1, 1]} : vector<128x8xi32> to vector<128x1xi32>
    %45 = vector.broadcast %44 : vector<128x1xi32> to vector<128x128xi32>
    %46 = arith.cmpi eq, %1, %45 : vector<128x128xi32>
    %47 = arith.extui %46 : vector<128x128xi1> to vector<128x128xi32>
    %48 = arith.sitofp %47 : vector<128x128xi32> to vector<128x128xf32>
    %49 = arith.truncf %48 : vector<128x128xf32> to vector<128x128xbf16>
    %50 = tpu.concatenate %7, %13, %19, %25, %31, %37, %43, %49 in 1 : vector<128x128xbf16>, vector<128x128xbf16>, vector<128x128xbf16>, vector<128x128xbf16>, vector<128x128xbf16>, vector<128x128xbf16>, vector<128x128xbf16>, vector<128x128xbf16> -> vector<128x1024xbf16>
    %c0_1 = arith.constant 0 : index
    %c0_2 = arith.constant 0 : index
    %51 = vector.load %arg2[%c0_1, %c0_2] : memref<1024x256xbf16, #tpu.memory_space<vmem>>, vector<1024x256xbf16>
    %cst = arith.constant dense<0.000000e+00> : vector<128x256xf32>
    %52 = tpu.matmul %50, %51, %cst {dimension_numbers = #tpu.dot_dimension_numbers<[1], [0], [0], [1], [0, 0, 1, 1], [], []>} : vector<128x1024xbf16>, vector<1024x256xbf16>, vector<128x256xf32> -> vector<128x256xf32>
    %c0_3 = arith.constant 0 : index
    %c0_4 = arith.constant 0 : index
    %53 = vector.load %arg3[%c0_3, %c0_4] : memref<1x256xf32, #tpu.memory_space<vmem>>, vector<1x256xf32>
    %54 = vector.broadcast %53 : vector<1x256xf32> to vector<128x256xf32>
    %55 = arith.addf %52, %54 : vector<128x256xf32>
    %cst_5 = arith.constant 0.000000e+00 : f32
    %56 = vector.broadcast %cst_5 : f32 to vector<128x256xf32>
    %57 = arith.maximumf %55, %56 : vector<128x256xf32>
    %58 = arith.truncf %57 : vector<128x256xf32> to vector<128x256xbf16>
    %c0_6 = arith.constant 0 : index
    %c0_7 = arith.constant 0 : index
    %59 = vector.load %arg4[%c0_6, %c0_7] : memref<256x128xbf16, #tpu.memory_space<vmem>>, vector<256x128xbf16>
    %cst_8 = arith.constant dense<0.000000e+00> : vector<128x128xf32>
    %60 = tpu.matmul %58, %59, %cst_8 {dimension_numbers = #tpu.dot_dimension_numbers<[1], [0], [0], [1], [0, 0, 1, 1], [], []>} : vector<128x256xbf16>, vector<256x128xbf16>, vector<128x128xf32> -> vector<128x128xf32>
    %c0_9 = arith.constant 0 : index
    %c0_10 = arith.constant 0 : index
    %61 = vector.load %arg5[%c0_9, %c0_10] : memref<1x128xf32, #tpu.memory_space<vmem>>, vector<1x128xf32>
    %62 = vector.broadcast %61 : vector<1x128xf32> to vector<128x128xf32>
    %63 = arith.addf %60, %62 : vector<128x128xf32>
    %cst_11 = arith.constant dense<0xFF800000> : vector<128xf32>
    %64 = vector.multi_reduction <maximumf>, %63, %cst_11 [1] : vector<128x128xf32> to vector<128xf32>
    %65 = vector.shape_cast %64 : vector<128xf32> to vector<128x1xf32>
    %66 = vector.broadcast %65 : vector<128x1xf32> to vector<128x128xf32>
    %67 = arith.subf %63, %66 : vector<128x128xf32>
    %68 = math.exp %67 : vector<128x128xf32>
    %cst_12 = arith.constant dense<0.000000e+00> : vector<128xf32>
    %69 = vector.multi_reduction <add>, %68, %cst_12 [1] : vector<128x128xf32> to vector<128xf32>
    %70 = vector.shape_cast %69 : vector<128xf32> to vector<128x1xf32>
    %71 = math.log %70 : vector<128x1xf32>
    %72 = vector.broadcast %71 : vector<128x1xf32> to vector<128x128xf32>
    %73 = arith.subf %67, %72 : vector<128x128xf32>
    %c0_13 = arith.constant 0 : index
    %c0_14 = arith.constant 0 : index
    %74 = vector.load %arg6[%c0_13, %c0_14] : memref<128x128xf32, #tpu.memory_space<vmem>>, vector<128x128xf32>
    tpu.vector_store %arg6[%c0_13, %c0_14], %73 {strides = array<i32>} : memref<128x128xf32, #tpu.memory_space<vmem>>, vector<128x128xf32>,
    return
  }
  func.func @transform_0(%arg0: i32) -> (i32, i32) {
    %c0_i32 = arith.constant 0 : i32
    %c0_i32_0 = arith.constant 0 : i32
    return %arg0, %c0_i32 : i32, i32
  }
  func.func @transform_1(%arg0: i32) -> (i32, i32) {
    %c0_i32 = arith.constant 0 : i32
    %c0_i32_0 = arith.constant 0 : i32
    %c0_i32_1 = arith.constant 0 : i32
    return %c0_i32, %c0_i32_0 : i32, i32
  }
  func.func @transform_2(%arg0: i32) -> (i32, i32) {
    %c0_i32 = arith.constant 0 : i32
    %c0_i32_0 = arith.constant 0 : i32
    %c0_i32_1 = arith.constant 0 : i32
    return %c0_i32, %c0_i32_0 : i32, i32
  }
  func.func @transform_3(%arg0: i32) -> (i32, i32) {
    %c0_i32 = arith.constant 0 : i32
    %c0_i32_0 = arith.constant 0 : i32
    %c0_i32_1 = arith.constant 0 : i32
    return %c0_i32, %c0_i32_0 : i32, i32
  }
  func.func @transform_4(%arg0: i32) -> (i32, i32) {
    %c0_i32 = arith.constant 0 : i32
    %c0_i32_0 = arith.constant 0 : i32
    %c0_i32_1 = arith.constant 0 : i32
    return %c0_i32, %c0_i32_0 : i32, i32
  }
  func.func @transform_5(%arg0: i32) -> (i32, i32) {
    %c0_i32 = arith.constant 0 : i32
    %c0_i32_0 = arith.constant 0 : i32
    return %arg0, %c0_i32 : i32, i32
  }
}

</mosaic_0001>

<bundles_post_ra>
// kernel: _forward.1
= control target key start
LH: loop header
LB: loop body
LE: loop exit
PB: predicated region body
PF: predicated region fallthrough
CT: control target
= control target key end

     0   :  { %10 = vsyncpa [#allocation3], 0  ;;  %s4930_s0 = inlined_call_operand.vmem [shape: s32[256,8], index: 0, kind: input, shape index: {}]   ;;  %s4931_s1 = inlined_call_operand.hbm [shape: bf16[1024,256], index: 1, kind: input, shape index: {}]   ;;  %s4932_s2 = inlined_call_operand.vmem [shape: f32[1,256], index: 2, kind: input, shape index: {}]   ;;  %s4933_s3 = inlined_call_operand.vmem [shape: bf16[256,128], index: 3, kind: input, shape index: {}]   ;;  %s4934_s4 = inlined_call_operand.vmem [shape: f32[1,128], index: 4, kind: input, shape index: {}]   ;;  %s4935_s5 = inlined_call_operand.hbm [shape: f32[256,128], index: 5, kind: output, shape index: {}]  }
   0x1   :  { %11 = vsyncpa [#allocation4], 0 }
   0x2   :  { %13 = vsyncpa [#allocation4 + $0x1], 0  ;;  %s3926_s18 = smov 0   ;;  %s3928_s19 = smov 0  }
   0x3   :  { %s3930_s20 = smov 0   ;;  %s3932_s21 = smov 0  }
   0x4 LB: > { %s3947_s22 = sadd.s32 4294967295, %s3879_s21   ;;  %s2868_s23 = sadd.s32 4294967294, %s3879_s21   ;;  %s3879_s21 = sphi %s3932_s21, %s4943_s21   ;;  %s3875_s20 = sphi %s3930_s20, %s4942_s20   ;;  %s3871_s19 = sphi %s3928_s19, %s4941_s19   ;;  %s3867_s18 = sphi %s3926_s18, %s4940_s18  }
   0x5   : > { %s3951_s24 = sadd.s32 1, %s3879_s21   ;;  %s136_s25 = sadd.s32 1, %s3875_s20 }
   0x6   : > { %s133_s26 = ssub.s32 %s3879_s21, %s3951_s24  ;;  %p146_p0 = scmp.ne.s32.totalorder %s3875_s20, %s3871_s19 }
   0x7   : > { %p134_p1 = scmp.eq.s32.totalorder %s133_s26, 0  ;;  %p147_p2 = scmp.eq.s32.totalorder %s3947_s22, 1 }
   0x8   : > { %p152_p3 = scmp.ne.s32.totalorder %s3871_s19, %s3867_s18  ;;  %p153_p4 = scmp.eq.s32.totalorder %s2868_s23, 1 }
   0x9   : > { %s3962_s27 = scalar_select %p134_p1, %s3875_s20, %s136_s25  }
   0xa   : > { %p3964_p5 = por %p147_p2, %p146_p0  ;;  %p3968_p6 = por %p153_p4, %p152_p3 }
   0xb   : > { %p2869_p7 = scmp.ge.s32.totalorder %s3879_s21, 1  ;;  %p160_p8 = scmp.lt.s32.totalorder %s3879_s21, 3 }
   0xc   : > { %s4937_s29 = scalar_select %p3968_p6, 1, 0 }
   0xd   : > { %p3378_p9 = scmp.eq.s32.totalorder %s3947_s22, 0  ;;  %p3975_p10 = pnand %p2869_p7, %p160_p8 }
   0xe   : > { %s3881_s6 = smov [#allocation2]  }
   0xf   : > { %s172_s7 = sshll.u32 %s3881_s6, 4  ;;  %p3370_p11 = pneg %p3975_p10  ;;  %s173_s7 = int_to_ptr.vmem [resolvable:$true] %s172_s7 }
  0x10   : > { %s3800_s8 = scalar_lea.vmem %s173_s7, 16384  ;;  %p3808_p3 = scmp.lt.s32.totalorder %s173_s7, %s173_s7 }
  0x11   : > { %p3371_p12 = pnand %p3378_p9, %p3370_p11  ;;  %p3801_p0 = scmp.ne.s32.totalorder %s173_s7, %s3800_s8 }
  0x12   : > { %p3809_p4 = scmp.lt.s32.totalorder %s3800_s8, %s3800_s8 }
  0x13   : > { %p3791_p13 = pneg %p3371_p12 }
  0x14   : > { %p3810_p6 = por %p3809_p4, %p3808_p3 }
  0x15   : > { %p3803_p1 = pnand %p3801_p0, %p3791_p13 }
  0x17   : > { %p3804_p2 = pneg %p3803_p1 }
  0x19   : > { %p3811_p7 = pnand %p3810_p6, %p3804_p2 }
  0x1b   : > { %3814 = shalt.err (!%p3811_p7)
}
  0x1c   : > { %s3882_s9 = smov 128   ;;  %s3883_s10 = smov 8  }
  0x1d   : > { %3373 = dma.hbm_to_vmem [thread:$0]  (!%p3371_p12), %s4931_s1, 16384, %s173_s7, [#allocation3], %s3882_s9, %s3882_s9, %s3883_s10  }
  0x1e   : > { %206 = sbr.rel (%p3975_p10) target bundleno = 1298 (0x512), region = 40 }
  0x23   : > { %3858 = dma.done.wait (%p3378_p9), [#allocation3], 16384  }
  0x24   : > { %3860 = vsyncadd (%p3378_p9), [#allocation3], 4294950912  ;;  %s2875_s13 = sshll.u32 %s3947_s22, 4  ;;  %v3884_v0 = vmov 1   ;;  %v3885_v1 = vmov 0   ;;  %v3886_v10 = vmov 3  }
  0x25   : > { %3427 = vset.pattern.permute.xlu0 %v3884_v0  ;;  %3428 = vset.pattern.permute.xlu1 %v3885_v1  ;;  %p235_p6 = scmp.lt.s32.totalorder %s2875_s13, 31  ;;  %v3503_v4 = vld [vmem:[#allocation2 + $0x74] ss:$8 sps:$4 sm:$0xff]   ;;  %v3505_v5 = vld [vmem:[#allocation2 + $0x70] ss:$8 sps:$4 sm:$0xff]   ;;  %v3887_v14 = vmov 2  }
  0x26   : > { %1872 = vmatprep.subr.bf16.mxu0 %v3503_v4  ;;  %v3506_v7 = vld [vmem:[#allocation2 + $0x64] ss:$8 sps:$4 sm:$0xff]   ;;  %v3508_v8 = vld [vmem:[#allocation2 + $0x60] ss:$8 sps:$4 sm:$0xff]   ;;  %v3509_v9 = vld [vmem:[#allocation2 + $0x54] ss:$8 sps:$4 sm:$0xff]  }
  0x27   : > { %s4945_s13 = smov (!%p235_p6, %s2875_s13), 31  ;;  %1873 = vmatpush1.bf16.msra.mxu0 %v3505_v5  ;;  %v3511_v12 = vld [vmem:[#allocation2 + $0x50] ss:$8 sps:$4 sm:$0xff]   ;;  %v3512_v13 = vld [vmem:[#allocation2 + $0x44] ss:$8 sps:$4 sm:$0xff]   ;;  %s231_s6 = sand.u32 1, %s3871_s19  }
  0x28   : > { %s2876_s14 = sshll.u32 %s4945_s13, 3  ;;  %1874 = vmatprep.subr.bf16.mxu0 %v3506_v7  ;;  %v3514_v16 = vld [vmem:[#allocation2 + $0x40] ss:$8 sps:$4 sm:$0xff]   ;;  %v3515_v17 = vld [vmem:[#allocation2 + $0x34] ss:$8 sps:$4 sm:$0xff]   ;;  %s2874_s7 = sshll.u32 %s231_s6, 7 }
  0x29   : > { %s3998_s17 = scalar_lea.vmem %s4930_s0, %s2876_s14  ;;  %v3517_v20 = vld [vmem:[#allocation2 + $0x30] ss:$8 sps:$4 sm:$0xff]   ;;  %v3518_v21 = vld [vmem:[#allocation2 + $0x24] ss:$8 sps:$4 sm:$0xff]   ;;  %v3520_v23 = vld [vmem:[#allocation2 + $0x20] ss:$8 sps:$4 sm:$0xff]  }
  0x2a   : > { %v4001_v2 = vld [vmem:[%s3998_s17] sm:$0xff]  ;;  %v4006_v3 = vld [vmem:[%s3998_s17 + $0x8] sm:$0xff]  ;;  %v4017_v11 = vld [vmem:[%s3998_s17 + $0x38] sm:$0xff]  ;;  %s4846_s8 = scalar_lea.vmem [#allocation5], %s2874_s7  ;;  %s3283_s9 = sshll.u32 %s3947_s22, 11 }
  0x2b   : > { %261 = vperm.xlu1 %3428, %v4001_v2   ;;  %365 = vperm.xlu0 %3427, %v4001_v2   ;;  %v4011_v6 = vld [vmem:[%s3998_s17 + $0x20] sm:$0xff]  ;;  %v4022_v15 = vld [vmem:[%s3998_s17 + $0x50] sm:$0xff]  ;;  %v4030_v19 = vld [vmem:[%s3998_s17 + $0x68] sm:$0xff]  ;;  %s2794_s10 = sshll.u32 %s4846_s8, 4  ;;  %s4882_s13 = scalar_lea.hbm %s4935_s5, %s3283_s9  ;;  %s4884_s10 = int_to_ptr.vmem [resolvable:$true] %s2794_s10 }
  0x2c   : > { %1875 = vmatpush1.bf16.msra.mxu0 %v3508_v8  ;;  %v4027_v18 = vld [vmem:[%s3998_s17 + $0x10] sm:$0xff]  ;;  %v4036_v22 = vld [vmem:[%s3998_s17 + $0x18] sm:$0xff]  ;;  %v3524_v28 = vld [vmem:[#allocation2 + $0x4] ss:$8 sps:$4 sm:$0xff]   ;;  %s4890_s14 = scalar_lea.sflag [#allocation4], %s231_s6  ;;  %s3815_s22 = scalar_lea.vmem %s4884_s10, 2048 }
  0x2d   : > { %1876 = vmatprep.subr.bf16.mxu0 %v3509_v9  ;;  %v3521_v24 = vld [vmem:[#allocation2 + $0x14] ss:$8 sps:$4 sm:$0xff]   ;;  %v3523_v25 = vld [vmem:[#allocation2 + $0x10] ss:$8 sps:$4 sm:$0xff]   ;;  %v3554_v29 = vld [vmem:[#allocation2 + $0x164] ss:$8 sps:$4 sm:$0xff]   ;;  %p3816_p8 = scmp.ne.s32.totalorder %s4884_s10, %s3815_s22 }
  0x2e   : > { %v3551_v26 = vld [vmem:[#allocation2 + $0x174] ss:$8 sps:$4 sm:$0xff]   ;;  %v3553_v27 = vld [vmem:[#allocation2 + $0x170] ss:$8 sps:$4 sm:$0xff]   ;;  %v3526_v30 = vld [vmem:[#allocation2] ss:$8 sps:$4 sm:$0xff]  }
  0x2f   : > { %264 = vperm.xlu1 %3428, %v4006_v3   ;;  %368 = vperm.xlu0 %3427, %v4006_v3   ;;  %v3556_v31 = vld [vmem:[#allocation2 + $0x160] ss:$8 sps:$4 sm:$0xff]   ;;  %v3527_v32 = vld [vmem:[#allocation2 + $0xf4] ss:$8 sps:$4 sm:$0xff]   ;;  %v3529_v34 = vld [vmem:[#allocation2 + $0xf0] ss:$8 sps:$4 sm:$0xff]   ;;  %p3817_p9 = pnand %p3816_p8, %p3964_p5 }
  0x30   : > { %1877 = vmatpush1.bf16.msra.mxu0 %v3511_v12  ;;  %1985 = vmatprep.subr.bf16.mxu1 %v3551_v26  ;;  %v3557_v33 = vld [vmem:[#allocation2 + $0x154] ss:$8 sps:$4 sm:$0xff]   ;;  %v3530_v35 = vld [vmem:[#allocation2 + $0xe4] ss:$8 sps:$4 sm:$0xff]   ;;  %v3559_v36 = vld [vmem:[#allocation2 + $0x150] ss:$8 sps:$4 sm:$0xff]  }
  0x31   : > { %1878 = vmatprep.subr.bf16.mxu0 %v3512_v13  ;;  %1986 = vmatpush1.bf16.msra.mxu1 %v3553_v27  ;;  %v3560_v37 = vld [vmem:[#allocation2 + $0x144] ss:$8 sps:$4 sm:$0xff]   ;;  %v3532_v38 = vld [vmem:[#allocation2 + $0xe0] ss:$8 sps:$4 sm:$0xff]   ;;  %v3533_v39 = vld [vmem:[#allocation2 + $0xd4] ss:$8 sps:$4 sm:$0xff]   ;;  %p3818_p10 = pneg %p3817_p9 }
  0x32   : > { %1987 = vmatprep.subr.bf16.mxu1 %v3554_v29  ;;  %v3562_v40 = vld [vmem:[#allocation2 + $0x140] ss:$8 sps:$4 sm:$0xff]   ;;  %v3563_v41 = vld [vmem:[#allocation2 + $0x134] ss:$8 sps:$4 sm:$0xff]   ;;  %v3535_v42 = vld [vmem:[#allocation2 + $0xd0] ss:$8 sps:$4 sm:$0xff]  }
  0x33   : > { %3429 = vset.pattern.permute.xlu1 %v3886_v10  ;;  %377 = vperm.xlu0 %3427, %v4011_v6   ;;  %v4053_v43 = vld [vmem:[%s3998_s17 + $0x28] sm:$0xff]  ;;  %v3565_v45 = vld [vmem:[#allocation2 + $0x130] ss:$8 sps:$4 sm:$0xff]   ;;  %v3539_v48 = vld [vmem:[#allocation2 + $0xb4] ss:$8 sps:$4 sm:$0xff]   ;;  %s3893_s15 = smov [#allocation5]  }
  0x34   : > { %576 = vperm.xlu1 %3429, %v4006_v3   ;;  %1879 = vmatpush1.bf16.msra.mxu0 %v3514_v16  ;;  %v3536_v44 = vld [vmem:[#allocation2 + $0xc4] ss:$8 sps:$4 sm:$0xff]   ;;  %v3538_v46 = vld [vmem:[#allocation2 + $0xc0] ss:$8 sps:$4 sm:$0xff]   ;;  %v3541_v50 = vld [vmem:[#allocation2 + $0xb0] ss:$8 sps:$4 sm:$0xff]  }
  0x35   : > { %1880 = vmatprep.subr.bf16.mxu0 %v3515_v17  ;;  %1988 = vmatpush1.bf16.msra.mxu1 %v3556_v31  ;;  %v3566_v47 = vld [vmem:[#allocation2 + $0x124] ss:$8 sps:$4 sm:$0xff]   ;;  %v3568_v51 = vld [vmem:[#allocation2 + $0x120] ss:$8 sps:$4 sm:$0xff]   ;;  %v3569_v53 = vld [vmem:[#allocation2 + $0x114] ss:$8 sps:$4 sm:$0xff]  }
  0x36   : > { %1989 = vmatprep.subr.bf16.mxu1 %v3557_v33  ;;  %v4060_v49 = vld [vmem:[%s3998_s17 + $0x40] sm:$0xff]  ;;  %v4066_v54 = vld [vmem:[%s3998_s17 + $0x58] sm:$0xff]  ;;  %v4072_v59 = vld [vmem:[%s3998_s17 + $0x70] sm:$0xff]  ;;  %v3889_v33 = vmov 5   ;;  %s3819_s16 = sshll.u32 %s3893_s15, 4  ;;  %s3820_s16 = int_to_ptr.vmem [resolvable:$false] %s3819_s16 }
  0x37   : > { %386 = vperm.xlu0 %3427, %v4017_v11   ;;  %v3542_v52 = vld [vmem:[#allocation2 + $0xa4] ss:$8 sps:$4 sm:$0xff]   ;;  %v3544_v55 = vld [vmem:[#allocation2 + $0xa0] ss:$8 sps:$4 sm:$0xff]   ;;  %v3571_v56 = vld [vmem:[#allocation2 + $0x110] ss:$8 sps:$4 sm:$0xff]   ;;  %p3822_p11 = scmp.lt.s32.totalorder %s4884_s10, %s3820_s16 }
  0x38   : > { %3430 = vset.pattern.permute.xlu1 %v3887_v14  ;;  %1881 = vmatpush1.bf16.msra.mxu0 %v3517_v20  ;;  %v3545_v57 = vld [vmem:[#allocation2 + $0x94] ss:$8 sps:$4 sm:$0xff]   ;;  %v3572_v58 = vld [vmem:[#allocation2 + $0x104] ss:$8 sps:$4 sm:$0xff]   ;;  %v3547_v60 = vld [vmem:[#allocation2 + $0x90] ss:$8 sps:$4 sm:$0xff]  }
  0x39   : > { %469 = vperm.xlu1 %3430, %v4001_v2   ;;  %1882 = vmatprep.subr.bf16.mxu0 %v3518_v21  ;;  %v3574_v61 = vld [vmem:[#allocation2 + $0x100] ss:$8 sps:$4 sm:$0xff]   ;;  %v3548_v62 = vld [vmem:[#allocation2 + $0x84] ss:$8 sps:$4 sm:$0xff]   ;;  %v3575_v63 = vld [vmem:[#allocation2 + $0x1f4] ss:$8 sps:$4 sm:$0xff]  }
  0x3a   : > { %1990 = vmatpush1.bf16.msra.mxu1 %v3559_v36  ;;  %v3550_v4 = vld [vmem:[#allocation2 + $0x80] ss:$8 sps:$4 sm:$0xff]   ;;  %v3577_v5 = vld [vmem:[#allocation2 + $0x1f0] ss:$8 sps:$4 sm:$0xff]   ;;  %v3578_v7 = vld [vmem:[#allocation2 + $0x1e4] ss:$8 sps:$4 sm:$0xff]  }
  0x3b   : > { %395 = vperm.xlu0 %3427, %v4022_v15   ;;  %1991 = vmatprep.subr.bf16.mxu1 %v3560_v37  ;;  %v3580_v8 = vld [vmem:[#allocation2 + $0x1e0] ss:$8 sps:$4 sm:$0xff]   ;;  %v3581_v9 = vld [vmem:[#allocation2 + $0x1d4] ss:$8 sps:$4 sm:$0xff]   ;;  %v3583_v13 = vld [vmem:[#allocation2 + $0x1d0] ss:$8 sps:$4 sm:$0xff]  }
  0x3c   : > { %1883 = vmatpush1.bf16.msra.mxu0 %v3520_v23  ;;  %v4081_v12 = vld [vmem:[%s3998_s17 + $0x30] sm:$0xff]  ;;  %v3584_v16 = vld [vmem:[#allocation2 + $0x1c4] ss:$8 sps:$4 sm:$0xff]   ;;  %v3586_v17 = vld [vmem:[#allocation2 + $0x1c0] ss:$8 sps:$4 sm:$0xff]  }
  0x3d   : > { %3431 = vset.pattern.permute.xlu1 %v3884_v0  ;;  %1884 = vmatprep.subr.bf16.mxu0 %v3521_v24  ;;  %v3587_v20 = vld [vmem:[#allocation2 + $0x1b4] ss:$8 sps:$4 sm:$0xff]   ;;  %v3589_v21 = vld [vmem:[#allocation2 + $0x1b0] ss:$8 sps:$4 sm:$0xff]   ;;  %v4091_v23 = vld [vmem:[%s3998_s17 + $0x48] sm:$0xff] }
  0x3e   : > { %371 = vperm.xlu1 %3431, %v4027_v18   ;;  %1992 = vmatpush1.bf16.msra.mxu1 %v3562_v40  ;;  %v3590_v24 = vld [vmem:[#allocation2 + $0x1a4] ss:$8 sps:$4 sm:$0xff]   ;;  %v3593_v27 = vld [vmem:[#allocation2 + $0x194] ss:$8 sps:$4 sm:$0xff]   ;;  %v3595_v29 = vld [vmem:[#allocation2 + $0x190] ss:$8 sps:$4 sm:$0xff]  }
  0x3f   : > { %404 = vperm.xlu0 %3427, %v4030_v19   ;;  %1993 = vmatprep.subr.bf16.mxu1 %v3563_v41  ;;  %v4096_v26 = vld [vmem:[%s3998_s17 + $0x60] sm:$0xff]  ;;  %v3892_v41 = vmov 4  }
  0x40   : > { %1885 = vmatpush1.bf16.msra.mxu0 %v3523_v25  ;;  %v3592_v25 = vld [vmem:[#allocation2 + $0x1a0] ss:$8 sps:$4 sm:$0xff]  }
  0x41   : > { %1886 = vmatprep.subr.bf16.mxu0 %v3524_v28  ;;  %v4101_v28 = vld [vmem:[%s3998_s17 + $0x78] sm:$0xff]  ;;  %v3598_v31 = vld [vmem:[#allocation2 + $0x180] ss:$8 sps:$4 sm:$0xff]  }
  0x42   : > { %374 = vperm.xlu1 %3431, %v4036_v22   ;;  %1994 = vmatpush1.bf16.msra.mxu1 %v3565_v45  ;;  %v3599_v45 = vld [vmem:[#allocation2 + $0x270] ss:$8 sps:$4 sm:$0xff]  }
  0x43   : > { %3452 = vset.pattern.permute.xlu0 %v3887_v14  ;;  %1995 = vmatprep.subr.bf16.mxu1 %v3566_v47  ;;  %v3604_v47 = vld [vmem:[#allocation2 + $0x264] ss:$8 sps:$4 sm:$0xff]  }
  0x44   : > { %472 = vperm.xlu0 %3452, %v4006_v3   ;;  %1887 = vmatpush1.bf16.msra.mxu0 %v3526_v30  ;;  %v3596_v30 = vld [vmem:[#allocation2 + $0x184] ss:$8 sps:$4 sm:$0xff]  }
  0x45   : > { %1888 = vmatprep.subr.bf16.mxu0 %v3527_v32  ;;  %v3888_v32 = vmov 6  }
  0x46   : > { %3432 = vset.pattern.permute.xlu1 %v3885_v1  ;;  %1996 = vmatpush1.bf16.msra.mxu1 %v3568_v51 }
  0x47   : > { %270 = vperm.xlu1 %3432, %v4036_v22   ;;  %1997 = vmatprep.subr.bf16.mxu1 %v3569_v53  ;;  %v3608_v53 = vld [vmem:[#allocation2 + $0x240] ss:$8 sps:$4 sm:$0xff]  }
  0x48   : > { %481 = vperm.xlu0 %3452, %v4011_v6   ;;  %1889 = vmatpush2.bf16.msra.mxu0 %v3529_v34  ;;  %v3890_v34 = vmov 7  }
  0x49   : > { %1890 = vmatprep.subr.bf16.mxu0 %v3530_v35 }
  0x4a   : > { %1998 = vmatpush1.bf16.msra.mxu1 %v3571_v56 }
  0x4b   : > { %3433 = vset.pattern.permute.xlu1 %v3886_v10  ;;  %1999 = vmatprep.subr.bf16.mxu1 %v3572_v58  ;;  %v3614_v58 = vld [vmem:[#allocation2 + $0x230] ss:$8 sps:$4 sm:$0xff]  }
  0x4c   : > { %579 = vperm.xlu1 %3433, %v4027_v18   ;;  %490 = vperm.xlu0 %3452, %v4017_v11  }
  0x4d   : > { %1891 = vmatpush2.bf16.msra.mxu0 %v3532_v38 }
  0x4e   : > { %1892 = vmatprep.subr.bf16.mxu0 %v3533_v39  ;;  %2000 = vmatpush1.bf16.msra.mxu1 %v3574_v61  ;;  %v3622_v61 = vld [vmem:[#allocation2 + $0x224] ss:$8 sps:$4 sm:$0xff]  }
  0x4f   : > { %2001 = vmatprep.subr.bf16.mxu1 %v3575_v63 }
  0x50   : > { %3434 = vset.pattern.permute.xlu1 %v3887_v14  ;;  %499 = vperm.xlu0 %3452, %v4022_v15  }
  0x51   : > { %475 = vperm.xlu1 %3434, %v4027_v18   ;;  %1893 = vmatpush2.bf16.msra.mxu0 %v3535_v42 }
  0x52   : > { %1894 = vmatprep.subr.bf16.mxu0 %v3536_v44  ;;  %2002 = vmatpush2.bf16.msra.mxu1 %v3577_v5  ;;  %v3601_v44 = vld [vmem:[#allocation2 + $0x274] ss:$8 sps:$4 sm:$0xff]  }
  0x53   : > { %2003 = vmatprep.subr.bf16.mxu1 %v3578_v7  ;;  %v3628_v5 = vld [vmem:[#allocation2 + $0x214] ss:$8 sps:$4 sm:$0xff]   ;;  %v3626_v7 = vld [vmem:[#allocation2 + $0x210] ss:$8 sps:$4 sm:$0xff]  }
  0x54   : > { %508 = vperm.xlu0 %3452, %v4030_v19  }
  0x55   : > { %478 = vperm.xlu1 %3434, %v4036_v22   ;;  %1895 = vmatpush2.bf16.msra.mxu0 %v3538_v46 }
  0x56   : > { %1896 = vmatprep.subr.bf16.mxu0 %v3539_v48  ;;  %2004 = vmatpush2.bf16.msra.mxu1 %v3580_v8 }
  0x57   : > { %2005 = vmatprep.subr.bf16.mxu1 %v3581_v9 }
  0x58   : > { %3456 = vset.pattern.permute.xlu0 %v3885_v1 }
  0x59   : > { %3435 = vset.pattern.permute.xlu1 %v3884_v0  ;;  %267 = vperm.xlu0 %3456, %v4027_v18  }
  0x5a   : > { %380 = vperm.xlu1 %3435, %v4053_v43   ;;  %1897 = vmatpush2.bf16.msra.mxu0 %v3541_v50  ;;  %v3607_v50 = vld [vmem:[#allocation2 + $0x254] ss:$8 sps:$4 sm:$0xff]  }
  0x5b   : > { %1898 = vmatprep.subr.bf16.mxu0 %v3542_v52  ;;  %2006 = vmatpush2.bf16.msra.mxu1 %v3583_v13  ;;  %v3634_v13 = vld [vmem:[#allocation2 + $0x204] ss:$8 sps:$4 sm:$0xff]  }
  0x5c   : > { %2007 = vmatprep.subr.bf16.mxu1 %v3584_v16  ;;  %v3632_v16 = vld [vmem:[#allocation2 + $0x200] ss:$8 sps:$4 sm:$0xff]  }
  0x5d   : > { %276 = vperm.xlu0 %3456, %v4053_v43  }
  0x5e   : > { %3436 = vset.pattern.permute.xlu1 %v3885_v1  ;;  %1899 = vmatpush2.bf16.msra.mxu0 %v3544_v55  ;;  %v3613_v55 = vld [vmem:[#allocation2 + $0x374] ss:$8 sps:$4 sm:$0xff]  }
  0x5f   : > { %273 = vperm.xlu1 %3436, %v4011_v6   ;;  %1900 = vmatprep.subr.bf16.mxu0 %v3545_v57  ;;  %v3616_v57 = vld [vmem:[#allocation2 + $0x234] ss:$8 sps:$4 sm:$0xff]  }
  0x60   : > { %2008 = vmatpush2.bf16.msra.mxu1 %v3586_v17  ;;  %v3640_v17 = vld [vmem:[#allocation2 + $0x2f4] ss:$8 sps:$4 sm:$0xff]  }
  0x61   : > { %285 = vperm.xlu0 %3456, %v4060_v49   ;;  %2009 = vmatprep.subr.bf16.mxu1 %v3587_v20 }
  0x62   : > { %1901 = vmatpush2.bf16.msra.mxu0 %v3547_v60 }
  0x63   : > { %3437 = vset.pattern.permute.xlu1 %v3886_v10  ;;  %1902 = vmatprep.subr.bf16.mxu0 %v3548_v62  ;;  %v3620_v62 = vld [vmem:[#allocation2 + $0x220] ss:$8 sps:$4 sm:$0xff]  }
  0x64   : > { %585 = vperm.xlu1 %3437, %v4011_v6   ;;  %2010 = vmatpush2.bf16.msra.mxu1 %v3589_v21  ;;  %v3638_v21 = vld [vmem:[#allocation2 + $0x2f0] ss:$8 sps:$4 sm:$0xff]  }
  0x65   : > { %294 = vperm.xlu0 %3456, %v4066_v54   ;;  %2011 = vmatprep.subr.bf16.mxu1 %v3590_v24 }
  0x66   : > { %1903 = vmatpush2.bf16.msra.mxu0 %v3550_v4 }
  0x67   : > { %2098 = vmatprep.subr.bf16.mxu0 %v3601_v44  ;;  %v3662_v44 = vld [vmem:[#allocation2 + $0x2b0] ss:$8 sps:$4 sm:$0xff]  }
  0x68   : > { %588 = vperm.xlu1 %3437, %v4053_v43   ;;  %2012 = vmatpush2.bf16.msra.mxu1 %v3592_v25  ;;  %v3646_v25 = vld [vmem:[#allocation2 + $0x2e4] ss:$8 sps:$4 sm:$0xff]  }
  0x69   : > { %303 = vperm.xlu0 %3456, %v4072_v59   ;;  %2013 = vmatprep.subr.bf16.mxu1 %v3593_v27 }
  0x6c   : > { %3438 = vset.pattern.permute.xlu1 %v3887_v14  ;;  %2014 = vmatpush2.bf16.msra.mxu1 %v3595_v29 }
  0x6d   : > { %484 = vperm.xlu1 %3438, %v4053_v43   ;;  %3458 = vset.pattern.permute.xlu0 %v3886_v10 }
  0x6e   : > { %573 = vperm.xlu0 %3458, %v4001_v2   ;;  %2015 = vmatprep.subr.bf16.mxu1 %v3596_v30  ;;  %v3650_v30 = vld [vmem:[#allocation2 + $0x2d0] ss:$8 sps:$4 sm:$0xff]  }
  0x70   : > { %2016 = vmatpush2.bf16.msra.mxu1 %v3598_v31 }
  0x71   : > { %3439 = vset.pattern.permute.xlu1 %v3884_v0  ;;  %2211 = vmatprep.subr.bf16.mxu1 %v3613_v55 }
  0x72   : > { %383 = vperm.xlu1 %3439, %v4081_v12   ;;  %582 = vperm.xlu0 %3458, %v4036_v22  }
  0x76   : > { %3440 = vset.pattern.permute.xlu1 %v3885_v1  ;;  %591 = vperm.xlu0 %3458, %v4081_v12  }
  0x77   : > { %279 = vperm.xlu1 %3440, %v4081_v12  }
  0x7a   : > { %600 = vperm.xlu0 %3458, %v4091_v23  }
  0x7b   : > { %282 = vperm.xlu1 %3440, %v4017_v11  }
  0x7e   : > { %609 = vperm.xlu0 %3458, %v4096_v26  }
  0x7f   : > { %3441 = vset.pattern.permute.xlu1 %v3886_v10 }
  0x80   : > { %594 = vperm.xlu1 %3441, %v4017_v11  }
  0x82   : > { %618 = vperm.xlu0 %3458, %v4101_v28  }
  0x84   : > { %3442 = vset.pattern.permute.xlu1 %v3887_v14 }
  0x85   : > { %487 = vperm.xlu1 %3442, %v4081_v12  }
  0x86   : > { %3465 = vset.pattern.permute.xlu0 %v3888_v32 }
  0x87   : > { %885 = vperm.xlu0 %3465, %v4001_v2  }
  0x89   : > { %3443 = vset.pattern.permute.xlu1 %v3884_v0 }
  0x8a   : > { %389 = vperm.xlu1 %3443, %v4060_v49  }
  0x8b   : > { %894 = vperm.xlu0 %3465, %v4036_v22  }
  0x8e   : > { %392 = vperm.xlu1 %3443, %v4091_v23  }
  0x8f   : > { %3471 = vset.pattern.permute.xlu0 %v3889_v33 }
  0x90   : > { %781 = vperm.xlu0 %3471, %v4001_v2   ;;  %v258_v2 = vlaneseq }
  0x92   : > { %3444 = vset.pattern.permute.xlu1 %v3885_v1  ;;  %v4131_v36 = vand.u32 127, %v258_v2 }
  0x93   : > { %288 = vperm.xlu1 %3444, %v4091_v23  }
  0x94   : > { %790 = vperm.xlu0 %3471, %v4036_v22  }
  0x97   : > { %3445 = vset.pattern.permute.xlu1 %v3886_v10 }
  0x98   : > { %597 = vperm.xlu1 %3445, %v4060_v49   ;;  %799 = vperm.xlu0 %3471, %v4081_v12  }
  0x9c   : > { %3446 = vset.pattern.permute.xlu1 %v3887_v14  ;;  %808 = vperm.xlu0 %3471, %v4091_v23  }
  0x9d   : > { %493 = vperm.xlu1 %3446, %v4060_v49  }
  0xa0   : > { %3481 = vset.pattern.permute.xlu0 %v3890_v34 }
  0xa1   : > { %496 = vperm.xlu1 %3446, %v4091_v23   ;;  %995 = vperm.xlu0 %3481, %v4027_v18   ;;  %v3891_v18 = vmov 1.0|1.0  }
  0xa5   : > { %3447 = vset.pattern.permute.xlu1 %v3884_v0  ;;  %1004 = vperm.xlu0 %3481, %v4053_v43  }
  0xa6   : > { %398 = vperm.xlu1 %3447, %v4066_v54   ;;  %v262_v22 = vpop.permute.xlu1 %261  ;;  %v366_v35 = vpop.permute.xlu0 %365 }
  0xa7   : > { %vm412_vm0 = vcmp.eq.s32.totalorder %v4131_v36, %v366_v35  ;;  %vm308_vm1 = vcmp.eq.s32.totalorder %v4131_v36, %v262_v22  ;;  %v3658_v35 = vld [vmem:[#allocation2 + $0x2c4] ss:$8 sps:$4 sm:$0xff]  }
  0xa9   : > { %1013 = vperm.xlu0 %3481, %v4060_v49   ;;  %v3602_v49 = vld [vmem:[#allocation2 + $0x260] ss:$8 sps:$4 sm:$0xff]  }
  0xaa   : > { %3448 = vset.pattern.permute.xlu1 %v3885_v1  ;;  %v265_v37 = vpop.permute.xlu1 %264  ;;  %v369_v38 = vpop.permute.xlu0 %368 }
  0xab   : > { %vm309_vm2 = vcmp.eq.s32.totalorder %v4131_v36, %v265_v37  ;;  %291 = vperm.xlu1 %3448, %v4022_v15   ;;  %vm413_vm3 = vcmp.eq.s32.totalorder %v4131_v36, %v369_v38  ;;  %v3656_v37 = vld [vmem:[#allocation2 + $0x2c0] ss:$8 sps:$4 sm:$0xff]  }
  0xac   : > { %vm3135_vm4 = vmpackc.low %vm309_vm2, %vm308_vm1 }
  0xad   : > { %vm3133_vm5 = vmpackc.low %vm413_vm3, %vm412_vm0  ;;  %1022 = vperm.xlu0 %3481, %v4066_v54  }
  0xae   : > { %3134 = vmatprep.mubr.msk.bf16.mxu0 %vm3133_vm5, %v3891_v18  ;;  %v4142_v39 = vpop.permute.xlu0 %377 }
  0xaf   : > { %3136 = vmatmul.mubr.msk.bf16.vlgmr.msra.gmra.mxu0 %vm3135_vm4, %v3891_v18  ;;  %3449 = vset.pattern.permute.xlu1 %v3886_v10  ;;  %v4146_v40 = vpop.permute.xlu1 %576  ;;  %vm416_vm9 = vcmp.eq.s32.totalorder %v4131_v36, %v4142_v39  ;;  %v3664_v39 = vld [vmem:[#allocation2 + $0x2b4] ss:$8 sps:$4 sm:$0xff]  }
  0xb0   : > { %603 = vperm.xlu1 %3449, %v4022_v15   ;;  %2099 = vmatpush1.bf16.msra.mxu0 %v3599_v45  ;;  %vm621_vm4 = vcmp.eq.s32.totalorder %v4131_v36, %v4146_v40 }
  0xb1   : > { %3488 = vset.pattern.permute.xlu0 %v3892_v41  ;;  %2100 = vmatprep.subr.bf16.mxu0 %v3604_v47 }
  0xb2   : > { %v4150_v42 = vpop.permute.xlu0 %386  ;;  %680 = vperm.xlu0 %3488, %v4006_v3  }
  0xb4   : > { %606 = vperm.xlu1 %3449, %v4066_v54   ;;  %v4154_v43 = vpop.permute.xlu1 %469  ;;  %2101 = vmatpush1.bf16.msra.mxu0 %v3602_v49  ;;  %v3611_v49 = vld [vmem:[#allocation2 + $0x370] ss:$8 sps:$4 sm:$0xff]  }
  0xb5   : > { %2102 = vmatprep.subr.bf16.mxu0 %v3607_v50  ;;  %vm516_vm5 = vcmp.eq.s32.totalorder %v4131_v36, %v4154_v43  ;;  %v3617_v43 = vld [vmem:[#allocation2 + $0x360] ss:$8 sps:$4 sm:$0xff]  }
  0xb6   : > { %v4156_v46 = vpop.permute.xlu0 %395  ;;  %689 = vperm.xlu0 %3488, %v4011_v6   ;;  %v3605_v6 = vld [vmem:[#allocation2 + $0x250] ss:$8 sps:$4 sm:$0xff]  }
  0xb8   : > { %3450 = vset.pattern.permute.xlu1 %v3887_v14  ;;  %2103 = vmatpush1.bf16.msra.mxu0 %v3605_v6  ;;  %v3682_v6 = vld [vmem:[#allocation2 + $0x284] ss:$8 sps:$4 sm:$0xff]  }
  0xb9   : > { %502 = vperm.xlu1 %3450, %v4066_v54   ;;  %v372_v48 = vpop.permute.xlu1 %371  ;;  %v3610_v54 = vld [vmem:[#allocation2 + $0x244] ss:$8 sps:$4 sm:$0xff]  }
  0xba   : > { %v4161_v3 = vpop.permute.xlu0 %404  ;;  %698 = vperm.xlu0 %3488, %v4017_v11   ;;  %vm414_vm6 = vcmp.eq.s32.totalorder %v4131_v36, %v372_v48  ;;  %2104 = vmatprep.subr.bf16.mxu0 %v3610_v54  ;;  %v3668_v48 = vld [vmem:[#allocation2 + $0x2a0] ss:$8 sps:$4 sm:$0xff]   ;;  %v3623_v54 = vld [vmem:[#allocation2 + $0x350] ss:$8 sps:$4 sm:$0xff]  }
  0xbc   : > { %2105 = vmatpush1.bf16.msra.mxu0 %v3608_v53 }
  0xbd   : > { %3451 = vset.pattern.permute.xlu1 %v3884_v0  ;;  %v375_v51 = vpop.permute.xlu1 %374  ;;  %2106 = vmatprep.subr.bf16.mxu0 %v3616_v57  ;;  %v3776_v57 = vld [vmem:[%s3998_s17] sm:$0xff] }
  0xbe   : > { %vm415_vm7 = vcmp.eq.s32.totalorder %v4131_v36, %v375_v51  ;;  %401 = vperm.xlu1 %3451, %v4096_v26   ;;  %707 = vperm.xlu0 %3488, %v4022_v15   ;;  %v3674_v51 = vld [vmem:[#allocation2 + $0x290] ss:$8 sps:$4 sm:$0xff]  }
  0xbf   : > { %vm3137_vm8 = vmpackc.low %vm415_vm7, %vm414_vm6  ;;  %v4168_v52 = vpop.permute.xlu0 %472  ;;  %vm419_vm7 = vcmp.eq.s32.totalorder %v4131_v36, %v4150_v42  ;;  %v3775_v42 = vld [vmem:[%s3998_s17 + $0x8] sm:$0xff] }
  0xc0   : > { %3138 = vmatprep.mubr.msk.bf16.mxu0 %vm3137_vm8, %v3891_v18  ;;  %2107 = vmatpush1.bf16.msra.mxu0 %v3614_v58  ;;  %vm517_vm2 = vcmp.eq.s32.totalorder %v4131_v36, %v4168_v52  ;;  %v3680_v52 = vld [vmem:[#allocation2 + $0x280] ss:$8 sps:$4 sm:$0xff]  }
  0xc1   : > { %2108 = vmatprep.subr.bf16.mxu0 %v3622_v61  ;;  %vm3167_vm8 = vmpackc.low %vm517_vm2, %vm516_vm5  ;;  %v3637_v61 = vld [vmem:[#allocation2 + $0x334] ss:$8 sps:$4 sm:$0xff]  }
  0xc2   : > { %3453 = vset.pattern.permute.xlu1 %v3885_v1  ;;  %v271_v11 = vpop.permute.xlu1 %270  ;;  %716 = vperm.xlu0 %3488, %v4030_v19  }
  0xc3   : > { %297 = vperm.xlu1 %3453, %v4096_v26   ;;  %v4174_v56 = vpop.permute.xlu0 %481  ;;  %vm311_vm10 = vcmp.eq.s32.totalorder %v4131_v36, %v271_v11  ;;  %v3631_v11 = vld [vmem:[#allocation2 + $0x344] ss:$8 sps:$4 sm:$0xff]  }
  0xc4   : > { %2109 = vmatpush1.bf16.msra.mxu0 %v3620_v62 }
  0xc5   : > { %2110 = vmatprep.subr.bf16.mxu0 %v3628_v5  ;;  %v3643_v5 = vld [vmem:[#allocation2 + $0x324] ss:$8 sps:$4 sm:$0xff]  }
  0xc6   : > { %3492 = vset.pattern.permute.xlu0 %v3888_v32 }
  0xc7   : > { %300 = vperm.xlu1 %3453, %v4030_v19   ;;  %v4178_v15 = vpop.permute.xlu1 %579  ;;  %v4180_v60 = vpop.permute.xlu0 %490  ;;  %903 = vperm.xlu0 %3492, %v4081_v12  }
  0xc8   : > { %2111 = vmatpush1.bf16.msra.mxu0 %v3626_v7 }
  0xc9   : > { %2112 = vmatprep.subr.bf16.mxu0 %v3634_v13  ;;  %v3647_v13 = vld [vmem:[#allocation2 + $0x310] ss:$8 sps:$4 sm:$0xff]  }
  0xcb   : > { %3454 = vset.pattern.permute.xlu1 %v3886_v10  ;;  %v4185_v63 = vpop.permute.xlu0 %499  ;;  %912 = vperm.xlu0 %3492, %v4091_v23  }
  0xcc   : > { %612 = vperm.xlu1 %3454, %v4030_v19   ;;  %v4188_v4 = vpop.permute.xlu1 %475  ;;  %2113 = vmatpush1.bf16.msra.mxu0 %v3632_v16  ;;  %v3655_v16 = vld [vmem:[#allocation2 + $0x304] ss:$8 sps:$4 sm:$0xff]  }
  0xcd   : > { %2114 = vmatprep.subr.bf16.mxu0 %v3640_v17  ;;  %v3653_v17 = vld [vmem:[#allocation2 + $0x300] ss:$8 sps:$4 sm:$0xff]  }
  0xcf   : > { %v4191_v8 = vpop.permute.xlu0 %508  ;;  %921 = vperm.xlu0 %3492, %v4096_v26  }
  0xd0   : > { %3455 = vset.pattern.permute.xlu1 %v3887_v14  ;;  %v4194_v9 = vpop.permute.xlu1 %478  ;;  %2115 = vmatpush2.bf16.msra.mxu0 %v3638_v21  ;;  %v3777_v21 = vld [vmem:[%s3998_s17 + $0x10] sm:$0xff] }
  0xd1   : > { %505 = vperm.xlu1 %3455, %v4096_v26   ;;  %2116 = vmatprep.subr.bf16.mxu0 %v3646_v25 }
  0xd3   : > { %3494 = vset.pattern.permute.xlu0 %v3889_v33 }
  0xd4   : > { %v268_v19 = vpop.permute.xlu0 %267  ;;  %817 = vperm.xlu0 %3494, %v4096_v26   ;;  %v3652_v26 = vld [vmem:[#allocation2 + $0x2d4] ss:$8 sps:$4 sm:$0xff]  }
  0xd5   : > { %vm310_vm11 = vcmp.eq.s32.totalorder %v4131_v36, %v268_v19  ;;  %3457 = vset.pattern.permute.xlu1 %v3884_v0  ;;  %v381_v20 = vpop.permute.xlu1 %380  ;;  %v3644_v0 = vld [vmem:[#allocation2 + $0x2e0] ss:$8 sps:$4 sm:$0xff]  }
  0xd6   : > { %vm3139_vm12 = vmpackc.low %vm311_vm10, %vm310_vm11  ;;  %vm417_vm13 = vcmp.eq.s32.totalorder %v4131_v36, %v381_v20  ;;  %407 = vperm.xlu1 %3457, %v4072_v59   ;;  %2117 = vmatpush2.bf16.msra.mxu0 %v3644_v0  ;;  %vm622_vm11 = vcmp.eq.s32.totalorder %v4131_v36, %v4178_v15  ;;  %v3629_v15 = vld [vmem:[#allocation2 + $0x340] ss:$8 sps:$4 sm:$0xff]   ;;  %v3661_v20 = vld [vmem:[#allocation2 + $0x3f4] ss:$8 sps:$4 sm:$0xff]  }
  0xd7   : > { %vm3141_vm14 = vmpackc.low %vm417_vm13, %vm416_vm9  ;;  %3140 = vmatmul.mubr.msk.bf16.gmra.mxu0 %vm3139_vm12, %v3891_v18  ;;  %2118 = vmatprep.subr.bf16.mxu0 %v3652_v26  ;;  %v3667_v0 = vld [vmem:[#allocation2 + $0x3e4] ss:$8 sps:$4 sm:$0xff]   ;;  %v3665_v26 = vld [vmem:[#allocation2 + $0x3e0] ss:$8 sps:$4 sm:$0xff]  }
  0xd8   : > { %3142 = vmatprep.mubr.msk.bf16.mxu0 %vm3141_vm14, %v3891_v18  ;;  %v277_v24 = vpop.permute.xlu0 %276  ;;  %826 = vperm.xlu0 %3494, %v4101_v28   ;;  %vm519_vm14 = vcmp.eq.s32.totalorder %v4131_v36, %v4194_v9  ;;  %v3649_v9 = vld [vmem:[#allocation2 + $0x314] ss:$8 sps:$4 sm:$0xff]  }
  0xd9   : > { %vm313_vm15 = vcmp.eq.s32.totalorder %v4131_v36, %v277_v24  ;;  %v3659_v24 = vld [vmem:[#allocation2 + $0x3f0] ss:$8 sps:$4 sm:$0xff]  }
  0xda   : > { %410 = vperm.xlu1 %3457, %v4101_v28   ;;  %v274_v27 = vpop.permute.xlu1 %273  ;;  %2119 = vmatpush2.bf16.msra.mxu0 %v3650_v30  ;;  %v3673_v30 = vld [vmem:[#allocation2 + $0x3d4] ss:$8 sps:$4 sm:$0xff]  }
  0xdb   : > { %vm312_vm0 = vcmp.eq.s32.totalorder %v4131_v36, %v274_v27  ;;  %2120 = vmatprep.subr.bf16.mxu0 %v3658_v35 }
  0xdc   : > { %v4213_v29 = vpop.permute.xlu0 %285  ;;  %vm3143_vm1 = vmpackc.low %vm313_vm15, %vm312_vm0  ;;  %3498 = vset.pattern.permute.xlu0 %v3890_v34  ;;  %vm518_vm0 = vcmp.eq.s32.totalorder %v4131_v36, %v4188_v4  ;;  %v3635_v4 = vld [vmem:[#allocation2 + $0x330] ss:$8 sps:$4 sm:$0xff]  }
  0xdd   : > { %1031 = vperm.xlu0 %3498, %v4072_v59  }
  0xde   : > { %3459 = vset.pattern.permute.xlu1 %v3885_v1  ;;  %2121 = vmatpush2.bf16.msra.mxu0 %v3656_v37  ;;  %v3679_v37 = vld [vmem:[#allocation2 + $0x3c4] ss:$8 sps:$4 sm:$0xff]  }
  0xdf   : > { %306 = vperm.xlu1 %3459, %v4101_v28   ;;  %v4217_v31 = vpop.permute.xlu1 %585  ;;  %3144 = vmatmul.mubr.msk.bf16.gmra.mxu0 %vm3143_vm1, %v3891_v18  ;;  %vm3171_vm1 = vmpackc.low %vm519_vm14, %vm518_vm0 }
  0xe0   : > { %v4220_v22 = vpop.permute.xlu0 %294  ;;  %2122 = vmatprep.subr.bf16.mxu0 %v3664_v39  ;;  %vm624_vm2 = vcmp.eq.s32.totalorder %v4131_v36, %v4217_v31  ;;  %v3778_v31 = vld [vmem:[%s3998_s17 + $0x18] sm:$0xff] }
  0xe1   : > { %3501 = vset.pattern.permute.xlu0 %v3888_v32 }
  0xe2   : > { %930 = vperm.xlu0 %3501, %v4101_v28   ;;  %2123 = vmatpush2.bf16.msra.mxu0 %v3662_v44  ;;  %v3685_v44 = vld [vmem:[#allocation2 + $0x3b4] ss:$8 sps:$4 sm:$0xff]  }
  0xe3   : > { %3460 = vset.pattern.permute.xlu1 %v3886_v10  ;;  %v4225_v1 = vpop.permute.xlu1 %588  ;;  %v3670_v10 = vld [vmem:[#allocation2 + $0x2a4] ss:$8 sps:$4 sm:$0xff]  }
  0xe4   : > { %615 = vperm.xlu1 %3460, %v4072_v59   ;;  %v4228_v38 = vpop.permute.xlu0 %303  ;;  %2124 = vmatprep.subr.bf16.mxu0 %v3670_v10  ;;  %vm625_vm15 = vcmp.eq.s32.totalorder %v4131_v36, %v4225_v1  ;;  %v3677_v1 = vld [vmem:[#allocation2 + $0x3c0] ss:$8 sps:$4 sm:$0xff]   ;;  %v3683_v10 = vld [vmem:[#allocation2 + $0x3b0] ss:$8 sps:$4 sm:$0xff]  }
  0xe6   : > { %3502 = vset.pattern.permute.xlu0 %v3890_v34  ;;  %2125 = vmatpush2.bf16.msra.mxu0 %v3668_v48  ;;  %v3686_v48 = vld [vmem:[#allocation2 + $0x3a0] ss:$8 sps:$4 sm:$0xff]  }
  0xe8   : > { %3461 = vset.pattern.permute.xlu1 %v3887_v14  ;;  %v4233_v45 = vpop.permute.xlu1 %484  ;;  %v3619_v14 = vld [vmem:[#allocation2 + $0x364] ss:$8 sps:$4 sm:$0xff]  }
  0xe9   : > { %511 = vperm.xlu1 %3461, %v4072_v59   ;;  %v574_v47 = vpop.permute.xlu0 %573  ;;  %v3676_v59 = vld [vmem:[#allocation2 + $0x294] ss:$8 sps:$4 sm:$0xff]  }
  0xea   : > { %vm620_vm3 = vcmp.eq.s32.totalorder %v4131_v36, %v574_v47  ;;  %2126 = vmatprep.subr.bf16.mxu0 %v3676_v59  ;;  %v3688_v47 = vld [vmem:[#allocation2 + $0x3a4] ss:$8 sps:$4 sm:$0xff]  }
  0xeb   : > { %vm3165_vm6 = vmpackc.low %vm621_vm4, %vm620_vm3  ;;  %2127 = vmatpush2.bf16.msra.mxu0 %v3674_v51  ;;  %v3779_v59 = vld [vmem:[%s3998_s17 + $0x20] sm:$0xff] }
  0xec   : > { %3166 = vmatprep.mubr.msk.bf16.mxu1 %vm3165_vm6, %v3891_v18  ;;  %2128 = vmatprep.subr.bf16.mxu0 %v3682_v6  ;;  %vm3173_vm3 = vmpackc.low %vm625_vm15, %vm624_vm2 }
  0xed   : > { %514 = vperm.xlu1 %3461, %v4101_v28   ;;  %v384_v40 = vpop.permute.xlu1 %383  ;;  %3168 = vmatmul.mubr.msk.bf16.vlgmr.msra.gmra.mxu1 %vm3167_vm8, %v3891_v18  ;;  %v583_v50 = vpop.permute.xlu0 %582  ;;  %v3625_v28 = vld [vmem:[#allocation2 + $0x354] ss:$8 sps:$4 sm:$0xff]   ;;  %vm521_vm8 = vcmp.eq.s32.totalorder %v4131_v36, %v4233_v45 }
  0xee   : > { %vm418_vm9 = vcmp.eq.s32.totalorder %v4131_v36, %v384_v40  ;;  %vm623_vm10 = vcmp.eq.s32.totalorder %v4131_v36, %v583_v50  ;;  %2212 = vmatpush1.bf16.msra.mxu1 %v3611_v49  ;;  %v3689_v40 = vld [vmem:[#allocation2 + $0x390] ss:$8 sps:$4 sm:$0xff]   ;;  %v3780_v50 = vld [vmem:[%s3998_s17 + $0x28] sm:$0xff] }
  0xef   : > { %vm3145_vm12 = vmpackc.low %vm419_vm7, %vm418_vm9  ;;  %2213 = vmatprep.subr.bf16.mxu1 %v3619_v14  ;;  %2129 = vmatpush2.bf16.msra.mxu0 %v3680_v52  ;;  %vm520_vm7 = vcmp.eq.s32.totalorder %v4131_v36, %v4174_v56  ;;  %v3641_v56 = vld [vmem:[#allocation2 + $0x320] ss:$8 sps:$4 sm:$0xff]   ;;  %v3691_v14 = vld [vmem:[#allocation2 + $0x394] ss:$8 sps:$4 sm:$0xff]  }
  0xf0   : > { %vm3169_vm13 = vmpackc.low %vm623_vm10, %vm622_vm11  ;;  %3146 = vmatprep.mubr.msk.bf16.mxu0 %vm3145_vm12, %v3891_v18 }
  0xf1   : > { %3170 = vmatprep.mubr.msk.bf16.mxu1 %vm3169_vm13, %v3891_v18  ;;  %3462 = vset.pattern.permute.xlu1 %v3889_v33  ;;  %v592_v58 = vpop.permute.xlu0 %591  ;;  %vm3175_vm10 = vmpackc.low %vm521_vm8, %vm520_vm7  ;;  %vm523_vm13 = vcmp.eq.s32.totalorder %v4131_v36, %v4180_v60 }
  0xf2   : > { %784 = vperm.xlu1 %3462, %v3775_v42   ;;  %v280_v53 = vpop.permute.xlu1 %279  ;;  %2214 = vmatpush1.bf16.msra.mxu1 %v3617_v43  ;;  %vm626_vm9 = vcmp.eq.s32.totalorder %v4131_v36, %v592_v58 }
  0xf3   : > { %2215 = vmatprep.subr.bf16.mxu1 %v3625_v28  ;;  %vm314_vm4 = vcmp.eq.s32.totalorder %v4131_v36, %v280_v53  ;;  %v3692_v28 = vld [vmem:[#allocation2 + $0x380] ss:$8 sps:$4 sm:$0xff]  }
  0xf5   : > { %3172 = vmatmul.mubr.msk.bf16.gmra.mxu1 %vm3171_vm1, %v3891_v18  ;;  %v601_v27 = vpop.permute.xlu0 %600 }
  0xf6   : > { %3463 = vset.pattern.permute.xlu1 %v3892_v41  ;;  %v283_v55 = vpop.permute.xlu1 %282  ;;  %3174 = vmatprep.mubr.msk.bf16.mxu1 %vm3173_vm3, %v3891_v18  ;;  %vm316_vm3 = vcmp.eq.s32.totalorder %v4131_v36, %v4213_v29  ;;  %v3671_v29 = vld [vmem:[#allocation2 + $0x3d0] ss:$8 sps:$4 sm:$0xff]  }
  0xf7   : > { %vm315_vm5 = vcmp.eq.s32.totalorder %v4131_v36, %v283_v55  ;;  %677 = vperm.xlu1 %3463, %v3776_v57   ;;  %2216 = vmatpush1.bf16.msra.mxu1 %v3623_v54 }
  0xf8   : > { %vm3147_vm6 = vmpackc.low %vm315_vm5, %vm314_vm4  ;;  %2217 = vmatprep.subr.bf16.mxu1 %v3631_v11 }
  0xf9   : > { %3148 = vmatmul.mubr.msk.bf16.gmra.mxu0 %vm3147_vm6, %v3891_v18  ;;  %vm629_vm6 = vcmp.eq.s32.totalorder %v4131_v36, %v601_v27  ;;  %v610_v43 = vpop.permute.xlu0 %609 }
  0xfb   : > { %3464 = vset.pattern.permute.xlu1 %v3890_v34  ;;  %v595_v62 = vpop.permute.xlu1 %594  ;;  %2218 = vmatpush1.bf16.msra.mxu1 %v3629_v15 }
  0xfc   : > { %vm627_vm11 = vcmp.eq.s32.totalorder %v4131_v36, %v595_v62  ;;  %989 = vperm.xlu1 %3464, %v3776_v57   ;;  %2219 = vmatprep.subr.bf16.mxu1 %v3637_v61 }
  0xfd   : > { %vm3177_vm12 = vmpackc.low %vm627_vm11, %vm626_vm9  ;;  %3176 = vmatmul.mubr.msk.bf16.gmra.mxu1 %vm3175_vm10, %v3891_v18  ;;  %v4320_v52 = vpop.permute.xlu0 %618 }
  0xfe   : > { %3178 = vmatprep.mubr.msk.bf16.mxu1 %vm3177_vm12, %v3891_v18  ;;  %vm422_vm12 = vcmp.eq.s32.totalorder %v4131_v36, %v4156_v46  ;;  %v3694_v46 = vld [vmem:[#allocation2 + $0x384] ss:$8 sps:$4 sm:$0xff]  }
  0xff   : > { %2220 = vmatpush1.bf16.msra.mxu1 %v3635_v4 }
 0x100   : > { %992 = vperm.xlu1 %3464, %v3775_v42   ;;  %v488_v7 = vpop.permute.xlu1 %487  ;;  %2221 = vmatprep.subr.bf16.mxu1 %v3643_v5 }
 0x101   : > { %vm522_vm14 = vcmp.eq.s32.totalorder %v4131_v36, %v488_v7 }
 0x102   : > { %vm3179_vm15 = vmpackc.low %vm523_vm13, %vm522_vm14 }
 0x103   : > { %2222 = vmatpush1.bf16.msra.mxu1 %v3641_v56 }
 0x104   : > { %3466 = vset.pattern.permute.xlu1 %v3888_v32  ;;  %2223 = vmatprep.subr.bf16.mxu1 %v3649_v9 }
 0x105   : > { %888 = vperm.xlu1 %3466, %v3775_v42   ;;  %v390_v19 = vpop.permute.xlu1 %389  ;;  %3180 = vmatmul.mubr.msk.bf16.gmra.mxu1 %vm3179_vm15, %v3891_v18  ;;  %vm319_vm15 = vcmp.eq.s32.totalorder %v4131_v36, %v4220_v22  ;;  %v4326_v42 = vpop.permute.xlu0 %885 }
 0x106   : > { %vm420_vm0 = vcmp.eq.s32.totalorder %v4131_v36, %v390_v19 }
 0x107   : > { %2224 = vmatpush1.bf16.msra.mxu1 %v3647_v13 }
 0x108   : > { %2225 = vmatprep.subr.bf16.mxu1 %v3655_v16 }
 0x109   : > { %3467 = vset.pattern.permute.xlu1 %v3889_v33  ;;  %v393_v60 = vpop.permute.xlu1 %392  ;;  %v4335_v54 = vpop.permute.xlu0 %894 }
 0x10a   : > { %vm421_vm1 = vcmp.eq.s32.totalorder %v4131_v36, %v393_v60  ;;  %787 = vperm.xlu1 %3467, %v3777_v21  }
 0x10b   : > { %vm3149_vm2 = vmpackc.low %vm421_vm1, %vm420_vm0  ;;  %2226 = vmatpush1.bf16.msra.mxu1 %v3653_v17 }
 0x10c   : > { %3150 = vmatprep.mubr.msk.bf16.mxu0 %vm3149_vm2, %v3891_v18  ;;  %2227 = vmatprep.subr.bf16.mxu1 %v3661_v20  ;;  %v3783_v20 = vld [vmem:[%s3998_s17 + $0x50] sm:$0xff] }
 0x10d   : > { %v4341_v57 = vpop.permute.xlu0 %781 }
 0x10e   : > { %3468 = vset.pattern.permute.xlu1 %v3892_v41  ;;  %v289_v25 = vpop.permute.xlu1 %288 }
 0x10f   : > { %vm317_vm4 = vcmp.eq.s32.totalorder %v4131_v36, %v289_v25  ;;  %683 = vperm.xlu1 %3468, %v3777_v21   ;;  %2228 = vmatpush2.bf16.msra.mxu1 %v3659_v24 }
 0x110   : > { %vm3151_vm5 = vmpackc.low %vm317_vm4, %vm316_vm3  ;;  %2229 = vmatprep.subr.bf16.mxu1 %v3667_v0 }
 0x111   : > { %3152 = vmatmul.mubr.msk.bf16.gmra.mxu0 %vm3151_vm5, %v3891_v18  ;;  %vm526_vm5 = vcmp.eq.s32.totalorder %v4131_v36, %v4185_v63  ;;  %v3781_v63 = vld [vmem:[%s3998_s17 + $0x38] sm:$0xff] }
 0x113   : > { %686 = vperm.xlu1 %3468, %v3778_v31   ;;  %v598_v35 = vpop.permute.xlu1 %597  ;;  %2230 = vmatpush2.bf16.msra.mxu1 %v3665_v26 }
 0x114   : > { %vm628_vm7 = vcmp.eq.s32.totalorder %v4131_v36, %v598_v35  ;;  %2231 = vmatprep.subr.bf16.mxu1 %v3673_v30  ;;  %v3785_v30 = vld [vmem:[%s3998_s17 + $0x68] sm:$0xff] }
 0x115   : > { %vm3181_vm8 = vmpackc.low %vm629_vm6, %vm628_vm7 }
 0x116   : > { %3182 = vmatprep.mubr.msk.bf16.mxu1 %vm3181_vm8, %v3891_v18  ;;  %vm425_vm8 = vcmp.eq.s32.totalorder %v4131_v36, %v4161_v3  ;;  %v4347_v3 = vpop.permute.xlu0 %790 }
 0x117   : > { %3469 = vset.pattern.permute.xlu1 %v3890_v34  ;;  %2232 = vmatpush2.bf16.msra.mxu1 %v3671_v29  ;;  %v3786_v29 = vld [vmem:[%s3998_s17 + $0x60] sm:$0xff] }
 0x118   : > { %998 = vperm.xlu1 %3469, %v3778_v31   ;;  %v494_v39 = vpop.permute.xlu1 %493  ;;  %2233 = vmatprep.subr.bf16.mxu1 %v3679_v37 }
 0x119   : > { %vm524_vm9 = vcmp.eq.s32.totalorder %v4131_v36, %v494_v39 }
 0x11a   : > { %v4355_v61 = vpop.permute.xlu0 %799 }
 0x11b   : > { %2234 = vmatpush2.bf16.msra.mxu1 %v3677_v1 }
 0x11c   : > { %3470 = vset.pattern.permute.xlu1 %v3888_v32  ;;  %v497_v45 = vpop.permute.xlu1 %496  ;;  %2235 = vmatprep.subr.bf16.mxu1 %v3685_v44 }
 0x11d   : > { %vm525_vm10 = vcmp.eq.s32.totalorder %v4131_v36, %v497_v45  ;;  %891 = vperm.xlu1 %3470, %v3777_v21   ;;  %v3784_v21 = vld [vmem:[%s3998_s17 + $0x58] sm:$0xff] }
 0x11e   : > { %vm3183_vm11 = vmpackc.low %vm525_vm10, %vm524_vm9  ;;  %v4362_v4 = vpop.permute.xlu0 %808 }
 0x11f   : > { %3184 = vmatmul.mubr.msk.bf16.gmra.mxu1 %vm3183_vm11, %v3891_v18 }
 0x120   : > { %2236 = vmatpush2.bf16.msra.mxu1 %v3683_v10 }
 0x121   : > { %3472 = vset.pattern.permute.xlu1 %v3889_v33  ;;  %v399_v49 = vpop.permute.xlu1 %398  ;;  %2237 = vmatprep.subr.bf16.mxu1 %v3688_v47 }
 0x122   : > { %vm423_vm13 = vcmp.eq.s32.totalorder %v4131_v36, %v399_v49  ;;  %793 = vperm.xlu1 %3472, %v3779_v59   ;;  %v4368_v56 = vpop.permute.xlu0 %995  ;;  %v1223_v49 = vshrl.u32 %v258_v2, 7  ;;  %v1220_v2 = vld [vmem:[%s4932_s2] sm:$0x3] }
 0x123   : > { %vm3153_vm14 = vmpackc.low %vm423_vm13, %vm422_vm12 }
 0x124   : > { %3154 = vmatprep.mubr.msk.bf16.mxu0 %vm3153_vm14, %v3891_v18  ;;  %2238 = vmatpush2.bf16.msra.mxu1 %v3686_v48  ;;  %vm632_vm14 = vcmp.eq.s32.totalorder %v4131_v36, %v610_v43 }
 0x125   : > { %2239 = vmatprep.subr.bf16.mxu1 %v3691_v14 }
 0x126   : > { %796 = vperm.xlu1 %3472, %v3780_v50   ;;  %v292_v51 = vpop.permute.xlu1 %291  ;;  %v4375_v9 = vpop.permute.xlu0 %1004 }
 0x127   : > { %vm318_vm0 = vcmp.eq.s32.totalorder %v4131_v36, %v292_v51 }
 0x128   : > { %vm3155_vm1 = vmpackc.low %vm319_vm15, %vm318_vm0  ;;  %2240 = vmatpush2.bf16.msra.mxu1 %v3689_v40  ;;  %v3787_v40 = vld [vmem:[%s3998_s17 + $0x70] sm:$0xff] }
 0x129   : > { %3156 = vmatmul.mubr.msk.bf16.gmra.mxu0 %vm3155_vm1, %v3891_v18  ;;  %2241 = vmatprep.subr.bf16.mxu1 %v3694_v46  ;;  %vm529_vm1 = vcmp.eq.s32.totalorder %v4131_v36, %v4191_v8  ;;  %v3782_v8 = vld [vmem:[%s3998_s17 + $0x40] sm:$0xff] }
 0x12a   : > { %3473 = vset.pattern.permute.xlu1 %v3892_v41 }
 0x12b   : > { %692 = vperm.xlu1 %3473, %v3780_v50   ;;  %v604_v6 = vpop.permute.xlu1 %603 }
 0x12c   : > { %2242 = vmatpush2.bf16.msra.mxu1 %v3692_v28  ;;  %vm630_vm2 = vcmp.eq.s32.totalorder %v4131_v36, %v604_v6 }
 0x12f   : > { %3474 = vset.pattern.permute.xlu1 %v3890_v34  ;;  %v607_v22 = vpop.permute.xlu1 %606 }
 0x130   : > { %vm631_vm3 = vcmp.eq.s32.totalorder %v4131_v36, %v607_v22  ;;  %1001 = vperm.xlu1 %3474, %v3779_v59   ;;  %v3788_v22 = vld [vmem:[%s3998_s17 + $0x78] sm:$0xff]  ;;  %s3821_s17 = scalar_lea.vmem %s3820_s16, 4096 }
 0x131   : > { %vm3185_vm4 = vmpackc.low %vm631_vm3, %vm630_vm2  ;;  %p3823_p12 = scmp.lt.s32.totalorder %s3821_s17, %s3815_s22 }
 0x132   : > { %3186 = vmatprep.mubr.msk.bf16.mxu1 %vm3185_vm4, %v3891_v18 }
 0x133   : > { %p3824_p13 = por %p3823_p12, %p3822_p11 }
 0x134   : > { %3475 = vset.pattern.permute.xlu1 %v3888_v32  ;;  %v503_v53 = vpop.permute.xlu1 %502 }
 0x135   : > { %vm527_vm6 = vcmp.eq.s32.totalorder %v4131_v36, %v503_v53  ;;  %897 = vperm.xlu1 %3475, %v3779_v59   ;;  %p3825_p0 = pnand %p3824_p13, %p3818_p10 }
 0x136   : > { %vm3187_vm7 = vmpackc.low %vm527_vm6, %vm526_vm5 }
 0x137   : > { %3188 = vmatmul.mubr.msk.bf16.gmra.mxu1 %vm3187_vm7, %v3891_v18  ;;  %vm322_vm7 = vcmp.eq.s32.totalorder %v4131_v36, %v4228_v38  ;;  %v4383_v38 = vpop.permute.xlu0 %1013 }
 0x139   : > { %900 = vperm.xlu1 %3475, %v3780_v50   ;;  %v402_v11 = vpop.permute.xlu1 %401  ;;  %v1224_v50 = vsub.s32 0, %v1223_v49 }
 0x13a   : > { %vm424_vm9 = vcmp.eq.s32.totalorder %v4131_v36, %v402_v11 }
 0x13b   : > { %vm3157_vm10 = vmpackc.low %vm425_vm8, %vm424_vm9  ;;  %v4388_v17 = vpop.permute.xlu0 %1022  ;;  %v4450_v28 = vrot.slane %v1220_v2, %v1224_v50 }
 0x13c   : > { %3158 = vmatprep.mubr.msk.bf16.mxu0 %vm3157_vm10, %v3891_v18  ;;  %vm635_vm10 = vcmp.eq.s32.totalorder %v4131_v36, %v4320_v52 }
 0x13d   : > { %3476 = vset.pattern.permute.xlu1 %v3889_v33 }
 0x13e   : > { %802 = vperm.xlu1 %3476, %v3781_v63   ;;  %v298_v55 = vpop.permute.xlu1 %297 }
 0x13f   : > { %vm320_vm11 = vcmp.eq.s32.totalorder %v4131_v36, %v298_v55  ;;  %v681_v60 = vpop.permute.xlu0 %680 }
 0x142   : > { %3477 = vset.pattern.permute.xlu1 %v3892_v41  ;;  %v301_v58 = vpop.permute.xlu1 %300 }
 0x143   : > { %vm321_vm12 = vcmp.eq.s32.totalorder %v4131_v36, %v301_v58  ;;  %695 = vperm.xlu1 %3477, %v4081_v12   ;;  %v690_v46 = vpop.permute.xlu0 %689 }
 0x144   : > { %vm3159_vm13 = vmpackc.low %vm321_vm12, %vm320_vm11 }
 0x145   : > { %3160 = vmatmul.mubr.msk.bf16.gmra.mxu0 %vm3159_vm13, %v3891_v18 }
 0x147   : > { %3478 = vset.pattern.permute.xlu1 %v3890_v34  ;;  %v613_v15 = vpop.permute.xlu1 %612 }
 0x148   : > { %vm633_vm15 = vcmp.eq.s32.totalorder %v4131_v36, %v613_v15  ;;  %1007 = vperm.xlu1 %3478, %v4081_v12  }
 0x149   : > { %vm3189_vm0 = vmpackc.low %vm633_vm15, %vm632_vm14 }
 0x14a   : > { %3190 = vmatprep.mubr.msk.bf16.mxu1 %vm3189_vm0, %v3891_v18  ;;  %vm828_vm0 = vcmp.eq.s32.totalorder %v4131_v36, %v4341_v57 }
 0x14c   : > { %1010 = vperm.xlu1 %3478, %v3781_v63   ;;  %v506_v62 = vpop.permute.xlu1 %505 }
 0x14d   : > { %vm528_vm2 = vcmp.eq.s32.totalorder %v4131_v36, %v506_v62  ;;  %v3696_v62 = vld [vmem:[%s4933_s3 + $0x38] sm:$0xff]  }
 0x14e   : > { %vm3191_vm3 = vmpackc.low %vm529_vm1, %vm528_vm2 }
 0x14f   : > { %3192 = vmatmul.mubr.msk.bf16.gmra.mxu1 %vm3191_vm3, %v3891_v18  ;;  %vm725_vm3 = vcmp.eq.s32.totalorder %v4131_v36, %v681_v60  ;;  %v3699_v60 = vld [vmem:[%s4933_s3 + $0x68] sm:$0xff]  }
 0x150   : > { %3479 = vset.pattern.permute.xlu1 %v3888_v32 }
 0x151   : > { %906 = vperm.xlu1 %3479, %v3781_v63   ;;  %v408_v12 = vpop.permute.xlu1 %407 }
 0x152   : > { %vm426_vm4 = vcmp.eq.s32.totalorder %v4131_v36, %v408_v12 }
 0x155   : > { %3480 = vset.pattern.permute.xlu1 %v3889_v33  ;;  %v411_v5 = vpop.permute.xlu1 %410 }
 0x156   : > { %vm427_vm5 = vcmp.eq.s32.totalorder %v4131_v36, %v411_v5  ;;  %805 = vperm.xlu1 %3480, %v3782_v8  }
 0x157   : > { %vm3161_vm6 = vmpackc.low %vm427_vm5, %vm426_vm4 }
 0x158   : > { %3162 = vmatprep.mubr.msk.bf16.mxu0 %vm3161_vm6, %v3891_v18 }
 0x15a   : > { %3482 = vset.pattern.permute.xlu1 %v3892_v41  ;;  %v307_v7 = vpop.permute.xlu1 %306 }
 0x15b   : > { %vm323_vm8 = vcmp.eq.s32.totalorder %v4131_v36, %v307_v7  ;;  %701 = vperm.xlu1 %3482, %v3782_v8  }
 0x15c   : > { %vm3163_vm9 = vmpackc.low %vm323_vm8, %vm322_vm7 }
 0x15d   : > { %3164 = vmatmul.mubr.msk.bf16.gmra.mxu0 %vm3163_vm9, %v3891_v18  ;;  %vm932_vm9 = vcmp.eq.s32.totalorder %v4131_v36, %v4326_v42 }
 0x15f   : > { %704 = vperm.xlu1 %3482, %v4091_v23   ;;  %v616_v13 = vpop.permute.xlu1 %615 }
 0x160   : > { %vm634_vm11 = vcmp.eq.s32.totalorder %v4131_v36, %v616_v13 }
 0x161   : > { %vm3193_vm12 = vmpackc.low %vm635_vm10, %vm634_vm11 }
 0x162   : > { %3194 = vmatprep.mubr.msk.bf16.mxu1 %vm3193_vm12, %v3891_v18  ;;  %vm831_vm12 = vcmp.eq.s32.totalorder %v4131_v36, %v4347_v3  ;;  %v3695_v3 = vld [vmem:[%s4933_s3 + $0x78] sm:$0xff]  }
 0x163   : > { %3483 = vset.pattern.permute.xlu1 %v3890_v34  ;;  %3284 = vmatprep.subr.bf16.mxu0 %v3695_v3 }
 0x164   : > { %1016 = vperm.xlu1 %3483, %v4091_v23   ;;  %v512_v16 = vpop.permute.xlu1 %511  ;;  %3348 = vmatprep.subr.bf16.mxu1 %v3695_v3 }
 0x165   : > { %vm530_vm13 = vcmp.eq.s32.totalorder %v4131_v36, %v512_v16 }
 0x168   : > { %3484 = vset.pattern.permute.xlu1 %v3888_v32  ;;  %v515_v19 = vpop.permute.xlu1 %514 }
 0x169   : > { %vm531_vm14 = vcmp.eq.s32.totalorder %v4131_v36, %v515_v19  ;;  %909 = vperm.xlu1 %3484, %v3782_v8  }
 0x16a   : > { %vm3195_vm15 = vmpackc.low %vm531_vm14, %vm530_vm13 }
 0x16b   : > { %3196 = vmatmul.mubr.msk.bf16.gmra.mxu1 %vm3195_vm15, %v3891_v18 }
 0x16d   : > { %3485 = vset.pattern.permute.xlu1 %v3889_v33  ;;  %v785_v23 = vpop.permute.xlu1 %784 }
 0x16e   : > { %vm829_vm1 = vcmp.eq.s32.totalorder %v4131_v36, %v785_v23  ;;  %811 = vperm.xlu1 %3485, %v3783_v20   ;;  %v699_v23 = vpop.permute.xlu0 %698 }
 0x16f   : > { %vm3197_vm2 = vmpackc.low %vm829_vm1, %vm828_vm0  ;;  %v1906_v37 = vpop.f32.mrf.mxu0 }
 0x170   : > { %3198 = vmatprep.mubr.msk.bf16.mxu0 %vm3197_vm2, %v3891_v18  ;;  %vm1038_vm2 = vcmp.eq.s32.totalorder %v4131_v36, %v4368_v56  ;;  %v3697_v56 = vld [vmem:[%s4933_s3 + $0x70] sm:$0xff]  }
 0x171   : > { %v1908_v39 = vpop.f32.mrf.mxu0 }
 0x172   : > { %814 = vperm.xlu1 %3485, %v3784_v21   ;;  %v678_v24 = vpop.permute.xlu1 %677 }
 0x173   : > { %vm724_vm4 = vcmp.eq.s32.totalorder %v4131_v36, %v678_v24  ;;  %v4431_v44 = vpop.f32.mrf.mxu0 }
 0x174   : > { %vm3199_vm5 = vmpackc.low %vm725_vm3, %vm724_vm4 }
 0x175   : > { %3200 = vmatmul.mubr.msk.bf16.vlgmr.msra.gmra.mxu0 %vm3199_vm5, %v3891_v18  ;;  %vm935_vm5 = vcmp.eq.s32.totalorder %v4131_v36, %v4335_v54  ;;  %v4435_v10 = vpop.f32.mrf.mxu0 }
 0x176   : > { %3486 = vset.pattern.permute.xlu1 %v3892_v41  ;;  %3285 = vmatpush3.bf16.msra.mxu0 %v3696_v62 }
 0x177   : > { %710 = vperm.xlu1 %3486, %v3784_v21   ;;  %v990_v0 = vpop.permute.xlu1 %989  ;;  %3286 = vmatprep.subr.bf16.mxu0 %v3697_v56 }
 0x178   : > { %vm1036_vm6 = vcmp.eq.s32.totalorder %v4131_v36, %v990_v0  ;;  %v3700_v0 = vld [vmem:[%s4933_s3 + $0x28] sm:$0xff]  }
 0x17b   : > { %3487 = vset.pattern.permute.xlu1 %v3890_v34  ;;  %v993_v25 = vpop.permute.xlu1 %992 }
 0x17c   : > { %vm1037_vm7 = vcmp.eq.s32.totalorder %v4131_v36, %v993_v25  ;;  %1019 = vperm.xlu1 %3487, %v3783_v20  }
 0x17d   : > { %vm3229_vm8 = vmpackc.low %vm1037_vm7, %vm1036_vm6 }
 0x17e   : > { %3230 = vmatprep.mubr.msk.bf16.mxu1 %vm3229_vm8, %v3891_v18 }
 0x180   : > { %3489 = vset.pattern.permute.xlu1 %v3888_v32  ;;  %v889_v27 = vpop.permute.xlu1 %888 }
 0x181   : > { %vm933_vm10 = vcmp.eq.s32.totalorder %v4131_v36, %v889_v27  ;;  %915 = vperm.xlu1 %3489, %v3783_v20  }
 0x182   : > { %vm3231_vm11 = vmpackc.low %vm933_vm10, %vm932_vm9 }
 0x183   : > { %3232 = vmatmul.mubr.msk.bf16.vlgmr.msra.gmra.mxu1 %vm3231_vm11, %v3891_v18  ;;  %vm728_vm11 = vcmp.eq.s32.totalorder %v4131_v36, %v690_v46 }
 0x184   : > { %3356 = vmatpush3.bf16.msra.mxu1 %v3696_v62 }
 0x185   : > { %918 = vperm.xlu1 %3489, %v3784_v21   ;;  %v788_v26 = vpop.permute.xlu1 %787  ;;  %3349 = vmatprep.subr.bf16.mxu1 %v3697_v56 }
 0x186   : > { %vm830_vm13 = vcmp.eq.s32.totalorder %v4131_v36, %v788_v26 }
 0x187   : > { %vm3201_vm14 = vmpackc.low %vm831_vm12, %vm830_vm13 }
 0x188   : > { %3202 = vmatprep.mubr.msk.bf16.mxu0 %vm3201_vm14, %v3891_v18  ;;  %vm1041_vm14 = vcmp.eq.s32.totalorder %v4131_v36, %v4375_v9  ;;  %v3698_v9 = vld [vmem:[%s4933_s3 + $0x30] sm:$0xff]  }
 0x189   : > { %3490 = vset.pattern.permute.xlu1 %v3889_v33  ;;  %3287 = vmatpush3.bf16.msra.mxu0 %v3698_v9 }
 0x18a   : > { %820 = vperm.xlu1 %3490, %v3785_v30   ;;  %v684_v31 = vpop.permute.xlu1 %683  ;;  %3357 = vmatpush3.bf16.msra.mxu1 %v3698_v9 }
 0x18b   : > { %vm726_vm15 = vcmp.eq.s32.totalorder %v4131_v36, %v684_v31  ;;  %3288 = vmatprep.subr.bf16.mxu0 %v3699_v60  ;;  %3350 = vmatprep.subr.bf16.mxu1 %v3699_v60 }
 0x18d   : > { %3289 = vmatpush3.bf16.msra.mxu0 %v3700_v0 }
 0x18e   : > { %3491 = vset.pattern.permute.xlu1 %v3892_v41  ;;  %v687_v35 = vpop.permute.xlu1 %686  ;;  %3358 = vmatpush3.bf16.msra.mxu1 %v3700_v0  ;;  %v3709_v0 = vld [vmem:[%s4933_s3 + $0x40] sm:$0xff]  }
 0x18f   : > { %vm727_vm0 = vcmp.eq.s32.totalorder %v4131_v36, %v687_v35  ;;  %713 = vperm.xlu1 %3491, %v3786_v29  }
 0x190   : > { %vm3203_vm1 = vmpackc.low %vm727_vm0, %vm726_vm15 }
 0x191   : > { %3204 = vmatmul.mubr.msk.bf16.gmra.mxu0 %vm3203_vm1, %v3891_v18 }
 0x193   : > { %3493 = vset.pattern.permute.xlu1 %v3890_v34  ;;  %v999_v1 = vpop.permute.xlu1 %998 }
 0x194   : > { %vm1039_vm3 = vcmp.eq.s32.totalorder %v4131_v36, %v999_v1  ;;  %1025 = vperm.xlu1 %3493, %v3786_v29   ;;  %v3701_v29 = vld [vmem:[%s4933_s3 + $0x60] sm:$0xff]   ;;  %v3703_v1 = vld [vmem:[%s4933_s3 + $0x58] sm:$0xff]  }
 0x195   : > { %vm3233_vm4 = vmpackc.low %vm1039_vm3, %vm1038_vm2  ;;  %3290 = vmatprep.subr.bf16.mxu0 %v3701_v29  ;;  %3351 = vmatprep.subr.bf16.mxu1 %v3701_v29 }
 0x196   : > { %3234 = vmatprep.mubr.msk.bf16.mxu1 %vm3233_vm4, %v3891_v18  ;;  %vm834_vm4 = vcmp.eq.s32.totalorder %v4131_v36, %v4355_v61 }
 0x197   : > { %v1916_v48 = vpop.f32.mrf.mxu0 }
 0x198   : > { %1028 = vperm.xlu1 %3493, %v3785_v30   ;;  %v892_v45 = vpop.permute.xlu1 %891 }
 0x199   : > { %vm934_vm6 = vcmp.eq.s32.totalorder %v4131_v36, %v892_v45  ;;  %v1918_v59 = vpop.f32.mrf.mxu0 }
 0x19a   : > { %vm3235_vm7 = vmpackc.low %vm935_vm5, %vm934_vm6 }
 0x19b   : > { %3236 = vmatmul.mubr.msk.bf16.gmra.mxu1 %vm3235_vm7, %v3891_v18  ;;  %v1920_v51 = vpop.f32.mrf.mxu0  ;;  %vm731_vm7 = vcmp.eq.s32.totalorder %v4131_v36, %v699_v23 }
 0x19c   : > { %3495 = vset.pattern.permute.xlu1 %v3888_v32  ;;  %v1921_v21 = vadd.f32 %v1920_v51, %v4450_v28 }
 0x19d   : > { %924 = vperm.xlu1 %3495, %v3785_v30   ;;  %v794_v47 = vpop.permute.xlu1 %793  ;;  %v1922_v52 = vpop.f32.mrf.mxu0 }
 0x19e   : > { %vm832_vm8 = vcmp.eq.s32.totalorder %v4131_v36, %v794_v47  ;;  %v4506_v30 = vpop.permute.xlu0 %707 }
 0x19f   : > { %v1926_v11 = vpop.f32.mrf.mxu0 }
 0x1a1   : > { %3496 = vset.pattern.permute.xlu1 %v3889_v33  ;;  %v797_v14 = vpop.permute.xlu1 %796  ;;  %v1228_v33 = vsub.s32 1, %v1223_v49  ;;  %v1928_v12 = vpop.f32.mrf.mxu0 }
 0x1a2   : > { %vm833_vm9 = vcmp.eq.s32.totalorder %v4131_v36, %v797_v14  ;;  %823 = vperm.xlu1 %3496, %v3787_v40  }
 0x1a3   : > { %vm3205_vm10 = vmpackc.low %vm833_vm9, %vm832_vm8  ;;  %v4455_v6 = vrot.slane %v1220_v2, %v1228_v33  ;;  %v1930_v16 = vpop.f32.mrf.mxu0  ;;  %v4533_v33 = vpop.permute.xlu0 %716 }
 0x1a4   : > { %3206 = vmatprep.mubr.msk.bf16.mxu0 %vm3205_vm10, %v3891_v18  ;;  %v1931_v50 = vadd.f32 %v1930_v16, %v4450_v28  ;;  %v3708_v16 = vld [vmem:[%s4933_s3 + $0x8] sm:$0xff]  }
 0x1a5   : > { %v1909_v54 = vadd.f32 %v1908_v39, %v4455_v6  ;;  %v1919_v13 = vadd.f32 %v1918_v59, %v4455_v6  ;;  %v1932_v25 = vpop.f32.mrf.mxu0  ;;  %v1923_v61 = vadd.f32 %v1922_v52, %v4455_v6  ;;  %v1927_v39 = vadd.f32 %v1926_v11, %v4450_v28  ;;  %v3704_v59 = vld [vmem:[%s4933_s3 + $0x18] sm:$0xff]  }
 0x1a6   : > { %3497 = vset.pattern.permute.xlu1 %v3892_v41  ;;  %v693_v43 = vpop.permute.xlu1 %692  ;;  %v1907_v41 = vadd.f32 %v1906_v37, %v4450_v28  ;;  %v3702_v37 = vld [vmem:[%s4933_s3 + $0x20] sm:$0xff]   ;;  %v1929_v49 = vadd.f32 %v1928_v12, %v4455_v6 }
 0x1a7   : > { %vm729_vm12 = vcmp.eq.s32.totalorder %v4131_v36, %v693_v43  ;;  %719 = vperm.xlu1 %3497, %v3787_v40   ;;  %3291 = vmatpush3.bf16.msra.mxu0 %v3702_v37  ;;  %v1933_v43 = vadd.f32 %v1932_v25, %v4455_v6 }
 0x1a8   : > { %vm3207_vm13 = vmpackc.low %vm729_vm12, %vm728_vm11  ;;  %3292 = vmatprep.subr.bf16.mxu0 %v3703_v1  ;;  %3359 = vmatpush3.bf16.msra.mxu1 %v3702_v37 }
 0x1a9   : > { %3208 = vmatmul.mubr.msk.bf16.gmra.mxu0 %vm3207_vm13, %v3891_v18  ;;  %3352 = vmatprep.subr.bf16.mxu1 %v3703_v1 }
 0x1ab   : > { %722 = vperm.xlu1 %3497, %v3788_v22   ;;  %v1002_v42 = vpop.permute.xlu1 %1001  ;;  %3293 = vmatpush3.bf16.msra.mxu0 %v3704_v59 }
 0x1ac   : > { %vm1040_vm15 = vcmp.eq.s32.totalorder %v4131_v36, %v1002_v42  ;;  %3360 = vmatpush3.bf16.msra.mxu1 %v3704_v59 }
 0x1ad   : > { %vm3237_vm0 = vmpackc.low %vm1041_vm14, %vm1040_vm15  ;;  %v2019_v53 = vpop.f32.mrf.mxu1 }
 0x1ae   : > { %v4461_v63 = vadd.f32 %v2019_v53, %v1907_v41  ;;  %3238 = vmatprep.mubr.msk.bf16.mxu1 %vm3237_vm0, %v3891_v18  ;;  %v3705_v53 = vld [vmem:[%s4933_s3 + $0x50] sm:$0xff]   ;;  %vm837_vm0 = vcmp.eq.s32.totalorder %v4131_v36, %v4362_v4 }
 0x1af   : > { %3499 = vset.pattern.permute.xlu1 %v3890_v34  ;;  %v2021_v55 = vpop.f32.mrf.mxu1  ;;  %v1917_v34 = vadd.f32 %v1916_v48, %v4450_v28  ;;  %3294 = vmatprep.subr.bf16.mxu0 %v3705_v53 }
 0x1b0   : > { %v4465_v57 = vadd.f32 %v2021_v55, %v1909_v54  ;;  %1034 = vperm.xlu1 %3499, %v3788_v22   ;;  %v898_v58 = vpop.permute.xlu1 %897  ;;  %v3706_v55 = vld [vmem:[%s4933_s3 + $0x10] sm:$0xff]   ;;  %3353 = vmatprep.subr.bf16.mxu1 %v3705_v53 }
 0x1b1   : > { %v4470_v15 = vpop.f32.mrf.mxu1  ;;  %vm936_vm1 = vcmp.eq.s32.totalorder %v4131_v36, %v898_v58  ;;  %3295 = vmatpush3.bf16.msra.mxu0 %v3706_v55  ;;  %3361 = vmatpush3.bf16.msra.mxu1 %v3706_v55 }
 0x1b3   : > { %v4475_v5 = vpop.f32.mrf.mxu1 }
 0x1b4   : > { %3500 = vset.pattern.permute.xlu1 %v3888_v32  ;;  %v901_v8 = vpop.permute.xlu1 %900 }
 0x1b5   : > { %vm937_vm2 = vcmp.eq.s32.totalorder %v4131_v36, %v901_v8  ;;  %927 = vperm.xlu1 %3500, %v3787_v40   ;;  %v2029_v7 = vpop.f32.mrf.mxu1 }
 0x1b6   : > { %vm3239_vm3 = vmpackc.low %vm937_vm2, %vm936_vm1  ;;  %v4488_v32 = vadd.f32 %v2029_v7, %v1917_v34  ;;  %v904_v34 = vpop.permute.xlu0 %903  ;;  %v3707_v7 = vld [vmem:[%s4933_s3 + $0x48] sm:$0xff]  }
 0x1b7   : > { %v2031_v19 = vpop.f32.mrf.mxu1  ;;  %3240 = vmatmul.mubr.msk.bf16.gmra.mxu1 %vm3239_vm3, %v3891_v18  ;;  %3296 = vmatprep.subr.bf16.mxu0 %v3707_v7  ;;  %vm938_vm13 = vcmp.eq.s32.totalorder %v4131_v36, %v904_v34 }
 0x1b8   : > { %v4493_v20 = vadd.f32 %v2031_v19, %v1919_v13  ;;  %3297 = vmatpush3.bf16.msra.mxu0 %v3708_v16  ;;  %3354 = vmatprep.subr.bf16.mxu1 %v3707_v7 }
 0x1b9   : > { %v803_v24 = vpop.permute.xlu1 %802  ;;  %v2033_v27 = vpop.f32.mrf.mxu1  ;;  %3362 = vmatpush3.bf16.msra.mxu1 %v3708_v16  ;;  %3298 = vmatprep.subr.bf16.mxu0 %v3709_v0 }
 0x1ba   : > { %vm835_vm5 = vcmp.eq.s32.totalorder %v4131_v36, %v803_v24  ;;  %v4504_v26 = vadd.f32 %v2033_v27, %v1921_v21  ;;  %v1936_v31 = vpop.f32.mrf.mxu0  ;;  %v3710_v27 = vld [vmem:[%s4933_s3] sm:$0xff]   ;;  %3355 = vmatprep.subr.bf16.mxu1 %v3709_v0  ;;  %v913_v59 = vpop.permute.xlu0 %912 }
 0x1bb   : > { %vm3209_vm6 = vmpackc.low %vm835_vm5, %vm834_vm4  ;;  %v2035_v35 = vpop.f32.mrf.mxu1  ;;  %v1937_v54 = vadd.f32 %v1936_v31, %v4450_v28 }
 0x1bc   : > { %3210 = vmatprep.mubr.msk.bf16.mxu0 %vm3209_vm6, %v3891_v18  ;;  %v4519_v45 = vadd.f32 %v2035_v35, %v1923_v61  ;;  %v1938_v40 = vpop.f32.mrf.mxu0  ;;  %3299 = vmatpush3.bf16.msra.mxu0 %v3710_v27  ;;  %vm1044_vm6 = vcmp.eq.s32.totalorder %v4131_v36, %v4383_v38 }
 0x1bd   : > { %v2039_v47 = vpop.f32.mrf.mxu1  ;;  %v1939_v3 = vadd.f32 %v1938_v40, %v4455_v6  ;;  %3363 = vmatpush3.bf16.msra.mxu1 %v3710_v27 }
 0x1be   : > { %v696_v48 = vpop.permute.xlu1 %695  ;;  %v4523_v14 = vadd.f32 %v2039_v47, %v1927_v39  ;;  %v1940_v42 = vpop.f32.mrf.mxu0 }
 0x1bf   : > { %vm730_vm8 = vcmp.eq.s32.totalorder %v4131_v36, %v696_v48  ;;  %v2041_v46 = vpop.f32.mrf.mxu1  ;;  %v1941_v9 = vadd.f32 %v1940_v42, %v4450_v28  ;;  %v922_v0 = vpop.permute.xlu0 %921 }
 0x1c0   : > { %vm3211_vm9 = vmpackc.low %vm731_vm7, %vm730_vm8  ;;  %v4530_v2 = vadd.f32 %v2041_v46, %v1929_v49  ;;  %v1942_v8 = vpop.f32.mrf.mxu0 }
 0x1c1   : > { %3212 = vmatmul.mubr.msk.bf16.gmra.mxu0 %vm3211_vm9, %v3891_v18  ;;  %v2043_v51 = vpop.f32.mrf.mxu1  ;;  %v1943_v23 = vadd.f32 %v1942_v8, %v4455_v6  ;;  %vm941_vm9 = vcmp.eq.s32.totalorder %v4131_v36, %v913_v59 }
 0x1c2   : > { %v4536_v52 = vadd.f32 %v2043_v51, %v1931_v50 }
 0x1c3   : > { %v1008_v22 = vpop.permute.xlu1 %1007  ;;  %v2045_v41 = vpop.f32.mrf.mxu1 }
 0x1c4   : > { %v4542_v11 = vadd.f32 %v2045_v41, %v1933_v43  ;;  %vm1042_vm10 = vcmp.eq.s32.totalorder %v4131_v36, %v1008_v22 }
 0x1c5   : > { %v2049_v58 = vpop.f32.mrf.mxu1 }
 0x1c6   : > { %v4548_v62 = vadd.f32 %v2049_v58, %v1937_v54 }
 0x1c7   : > { %v1011_v12 = vpop.permute.xlu1 %1010  ;;  %v2051_v56 = vpop.f32.mrf.mxu1 }
 0x1c8   : > { %vm1043_vm11 = vcmp.eq.s32.totalorder %v4131_v36, %v1011_v12  ;;  %v4556_v13 = vadd.f32 %v2051_v56, %v1939_v3 }
 0x1c9   : > { %vm3241_vm12 = vmpackc.low %vm1043_vm11, %vm1042_vm10  ;;  %v2053_v19 = vpop.f32.mrf.mxu1 }
 0x1ca   : > { %3242 = vmatprep.mubr.msk.bf16.mxu1 %vm3241_vm12, %v3891_v18  ;;  %v4563_v60 = vadd.f32 %v2053_v19, %v1941_v9 }
 0x1cb   : > { %v2055_v21 = vpop.f32.mrf.mxu1 }
 0x1cc   : > { %v907_v24 = vpop.permute.xlu1 %906  ;;  %v4569_v25 = vadd.f32 %v2055_v21, %v1943_v23 }
 0x1cd   : > { %vm939_vm14 = vcmp.eq.s32.totalorder %v4131_v36, %v907_v24 }
 0x1ce   : > { %vm3243_vm15 = vmpackc.low %vm939_vm14, %vm938_vm13 }
 0x1cf   : > { %3244 = vmatmul.mubr.msk.bf16.gmra.mxu1 %vm3243_vm15, %v3891_v18  ;;  %vm734_vm15 = vcmp.eq.s32.totalorder %v4131_v36, %v4506_v30 }
 0x1d1   : > { %v806_v61 = vpop.permute.xlu1 %805  ;;  %v1946_v31 = vpop.f32.mrf.mxu0 }
 0x1d2   : > { %vm836_vm1 = vcmp.eq.s32.totalorder %v4131_v36, %v806_v61  ;;  %v1947_v4 = vadd.f32 %v1946_v31, %v4450_v28 }
 0x1d3   : > { %vm3213_vm2 = vmpackc.low %vm837_vm0, %vm836_vm1  ;;  %v1948_v29 = vpop.f32.mrf.mxu0 }
 0x1d4   : > { %3214 = vmatprep.mubr.msk.bf16.mxu0 %vm3213_vm2, %v3891_v18  ;;  %v1949_v48 = vadd.f32 %v1948_v29, %v4455_v6  ;;  %vm1047_vm2 = vcmp.eq.s32.totalorder %v4131_v36, %v4388_v17 }
 0x1d5   : > { %v1950_v1 = vpop.f32.mrf.mxu0 }
 0x1d6   : > { %v702_v35 = vpop.permute.xlu1 %701  ;;  %v1951_v50 = vadd.f32 %v1950_v1, %v4450_v28 }
 0x1d7   : > { %vm732_vm3 = vcmp.eq.s32.totalorder %v4131_v36, %v702_v35  ;;  %v1952_v40 = vpop.f32.mrf.mxu0 }
 0x1d8   : > { %v1953_v43 = vadd.f32 %v1952_v40, %v4455_v6 }
 0x1da   : > { %v705_v37 = vpop.permute.xlu1 %704 }
 0x1db   : > { %vm733_vm4 = vcmp.eq.s32.totalorder %v4131_v36, %v705_v37  ;;  %v818_v37 = vpop.permute.xlu0 %817 }
 0x1dc   : > { %vm3215_vm5 = vmpackc.low %vm733_vm4, %vm732_vm3 }
 0x1dd   : > { %3216 = vmatmul.mubr.msk.bf16.gmra.mxu0 %vm3215_vm5, %v3891_v18 }
 0x1df   : > { %v1017_v39 = vpop.permute.xlu1 %1016  ;;  %v2059_v47 = vpop.f32.mrf.mxu1 }
 0x1e0   : > { %vm1045_vm7 = vcmp.eq.s32.totalorder %v4131_v36, %v1017_v39  ;;  %v4588_v49 = vadd.f32 %v2059_v47, %v1947_v4 }
 0x1e1   : > { %vm3245_vm8 = vmpackc.low %vm1045_vm7, %vm1044_vm6  ;;  %v2061_v46 = vpop.f32.mrf.mxu1 }
 0x1e2   : > { %v4591_v51 = vadd.f32 %v2061_v46, %v1949_v48  ;;  %3246 = vmatprep.mubr.msk.bf16.mxu1 %vm3245_vm8, %v3891_v18  ;;  %vm840_vm8 = vcmp.eq.s32.totalorder %v4131_v36, %v818_v37 }
 0x1e3   : > { %v2063_v38 = vpop.f32.mrf.mxu1 }
 0x1e4   : > { %v4596_v22 = vadd.f32 %v2063_v38, %v1951_v50  ;;  %v910_v42 = vpop.permute.xlu1 %909 }
 0x1e5   : > { %vm940_vm10 = vcmp.eq.s32.totalorder %v4131_v36, %v910_v42  ;;  %v2065_v41 = vpop.f32.mrf.mxu1 }
 0x1e6   : > { %vm3247_vm11 = vmpackc.low %vm941_vm9, %vm940_vm10  ;;  %v4599_v53 = vadd.f32 %v2065_v41, %v1953_v43 }
 0x1e7   : > { %3248 = vmatmul.mubr.msk.bf16.gmra.mxu1 %vm3247_vm11, %v3891_v18  ;;  %vm737_vm11 = vcmp.eq.s32.totalorder %v4131_v36, %v4533_v33 }
 0x1e9   : > { %v812_v54 = vpop.permute.xlu1 %811  ;;  %v1956_v55 = vpop.f32.mrf.mxu0 }
 0x1ea   : > { %vm838_vm12 = vcmp.eq.s32.totalorder %v4131_v36, %v812_v54  ;;  %v1957_v8 = vadd.f32 %v1956_v55, %v4450_v28 }
 0x1eb   : > { %v1958_v3 = vpop.f32.mrf.mxu0 }
 0x1ec   : > { %v1959_v9 = vadd.f32 %v1958_v3, %v4455_v6 }
 0x1ed   : > { %v815_v58 = vpop.permute.xlu1 %814  ;;  %v1960_v34 = vpop.f32.mrf.mxu0 }
 0x1ee   : > { %vm839_vm13 = vcmp.eq.s32.totalorder %v4131_v36, %v815_v58  ;;  %v1961_v23 = vadd.f32 %v1960_v34, %v4450_v28 }
 0x1ef   : > { %vm3217_vm14 = vmpackc.low %vm839_vm13, %vm838_vm12  ;;  %v1962_v16 = vpop.f32.mrf.mxu0 }
 0x1f0   : > { %3218 = vmatprep.mubr.msk.bf16.mxu0 %vm3217_vm14, %v3891_v18  ;;  %v1963_v27 = vadd.f32 %v1962_v16, %v4455_v6 }
 0x1f2   : > { %v711_v12 = vpop.permute.xlu1 %710 }
 0x1f3   : > { %vm735_vm0 = vcmp.eq.s32.totalorder %v4131_v36, %v711_v12 }
 0x1f4   : > { %vm3219_vm1 = vmpackc.low %vm735_vm0, %vm734_vm15 }
 0x1f5   : > { %3220 = vmatmul.mubr.msk.bf16.gmra.mxu0 %vm3219_vm1, %v3891_v18  ;;  %vm944_vm1 = vcmp.eq.s32.totalorder %v4131_v36, %v922_v0 }
 0x1f7   : > { %v1020_v56 = vpop.permute.xlu1 %1019  ;;  %v2069_v7 = vpop.f32.mrf.mxu1 }
 0x1f8   : > { %vm1046_vm3 = vcmp.eq.s32.totalorder %v4131_v36, %v1020_v56  ;;  %v4614_v30 = vadd.f32 %v2069_v7, %v1957_v8  ;;  %v827_v56 = vpop.permute.xlu0 %826 }
 0x1f9   : > { %vm3249_vm4 = vmpackc.low %vm1047_vm2, %vm1046_vm3  ;;  %v2071_v19 = vpop.f32.mrf.mxu1 }
 0x1fa   : > { %v4617_v21 = vadd.f32 %v2071_v19, %v1959_v9  ;;  %3250 = vmatprep.mubr.msk.bf16.mxu1 %vm3249_vm4, %v3891_v18  ;;  %vm843_vm4 = vcmp.eq.s32.totalorder %v4131_v36, %v827_v56 }
 0x1fb   : > { %v2073_v24 = vpop.f32.mrf.mxu1 }
 0x1fc   : > { %v4621_v17 = vadd.f32 %v2073_v24, %v1961_v23  ;;  %v916_v61 = vpop.permute.xlu1 %915  ;;  %v1032_v24 = vpop.permute.xlu0 %1031 }
 0x1fd   : > { %v2075_v31 = vpop.f32.mrf.mxu1  ;;  %vm942_vm5 = vcmp.eq.s32.totalorder %v4131_v36, %v916_v61 }
 0x1fe   : > { %v4623_v35 = vadd.f32 %v2075_v31, %v1963_v27 }
 0x200   : > { %v919_v29 = vpop.permute.xlu1 %918 }
 0x201   : > { %vm943_vm6 = vcmp.eq.s32.totalorder %v4131_v36, %v919_v29 }
 0x202   : > { %vm3251_vm7 = vmpackc.low %vm943_vm6, %vm942_vm5 }
 0x203   : > { %3252 = vmatmul.mubr.msk.bf16.gmra.mxu1 %vm3251_vm7, %v3891_v18 }
 0x205   : > { %v821_v1 = vpop.permute.xlu1 %820  ;;  %v1966_v4 = vpop.f32.mrf.mxu0 }
 0x206   : > { %vm841_vm9 = vcmp.eq.s32.totalorder %v4131_v36, %v821_v1  ;;  %v1967_v59 = vadd.f32 %v1966_v4, %v4450_v28  ;;  %v931_v1 = vpop.permute.xlu0 %930 }
 0x207   : > { %vm3221_vm10 = vmpackc.low %vm841_vm9, %vm840_vm8  ;;  %v1968_v39 = vpop.f32.mrf.mxu0 }
 0x208   : > { %3222 = vmatprep.mubr.msk.bf16.mxu0 %vm3221_vm10, %v3891_v18  ;;  %v1969_v50 = vadd.f32 %v1968_v39, %v4455_v6  ;;  %vm1050_vm10 = vcmp.eq.s32.totalorder %v4131_v36, %v1032_v24 }
 0x209   : > { %v1970_v48 = vpop.f32.mrf.mxu0 }
 0x20a   : > { %v714_v47 = vpop.permute.xlu1 %713  ;;  %v1971_v41 = vadd.f32 %v1970_v48, %v4450_v28 }
 0x20b   : > { %vm736_vm12 = vcmp.eq.s32.totalorder %v4131_v36, %v714_v47  ;;  %v1972_v43 = vpop.f32.mrf.mxu0 }
 0x20c   : > { %vm3223_vm13 = vmpackc.low %vm737_vm11, %vm736_vm12  ;;  %v1973_v58 = vadd.f32 %v1972_v43, %v4455_v6 }
 0x20d   : > { %3224 = vmatmul.mubr.msk.bf16.gmra.mxu0 %vm3223_vm13, %v3891_v18  ;;  %vm947_vm13 = vcmp.eq.s32.totalorder %v4131_v36, %v931_v1 }
 0x20f   : > { %v1026_v40 = vpop.permute.xlu1 %1025  ;;  %v2079_v46 = vpop.f32.mrf.mxu1 }
 0x210   : > { %v4637_v38 = vadd.f32 %v2079_v46, %v1967_v59  ;;  %vm1048_vm14 = vcmp.eq.s32.totalorder %v4131_v36, %v1026_v40 }
 0x211   : > { %v2081_v42 = vpop.f32.mrf.mxu1 }
 0x212   : > { %v4640_v54 = vadd.f32 %v2081_v42, %v1969_v50 }
 0x213   : > { %v1029_v33 = vpop.permute.xlu1 %1028  ;;  %v2083_v55 = vpop.f32.mrf.mxu1 }
 0x214   : > { %vm1049_vm15 = vcmp.eq.s32.totalorder %v4131_v36, %v1029_v33  ;;  %v4645_v3 = vadd.f32 %v2083_v55, %v1971_v41 }
 0x215   : > { %vm3253_vm0 = vmpackc.low %vm1049_vm15, %vm1048_vm14  ;;  %v2085_v12 = vpop.f32.mrf.mxu1 }
 0x216   : > { %v4647_v34 = vadd.f32 %v2085_v12, %v1973_v58  ;;  %3254 = vmatprep.mubr.msk.bf16.mxu1 %vm3253_vm0, %v3891_v18  ;;  %v1911_v58 = vadd.f32 %v4431_v44, %v4450_v28 }
 0x218   : > { %v925_v8 = vpop.permute.xlu1 %924  ;;  %v2024_v56 = vadd.f32 %v4470_v15, %v1911_v58 }
 0x219   : > { %vm945_vm2 = vcmp.eq.s32.totalorder %v4131_v36, %v925_v8  ;;  %v1913_v8 = vadd.f32 %v4435_v10, %v4455_v6 }
 0x21a   : > { %vm3255_vm3 = vmpackc.low %vm945_vm2, %vm944_vm1 }
 0x21b   : > { %3256 = vmatmul.mubr.msk.bf16.gmra.mxu1 %vm3255_vm3, %v3891_v18 }
 0x21d   : > { %v824_v7 = vpop.permute.xlu1 %823  ;;  %v1976_v9 = vpop.f32.mrf.mxu0 }
 0x21e   : > { %vm842_vm5 = vcmp.eq.s32.totalorder %v4131_v36, %v824_v7  ;;  %v1977_v27 = vadd.f32 %v1976_v9, %v4450_v28  ;;  %v2026_v9 = vadd.f32 %v4475_v5, %v1913_v8 }
 0x21f   : > { %vm3225_vm6 = vmpackc.low %vm843_vm4, %vm842_vm5  ;;  %v1978_v19 = vpop.f32.mrf.mxu0 }
 0x220   : > { %3226 = vmatprep.mubr.msk.bf16.mxu0 %vm3225_vm6, %v3891_v18  ;;  %v1979_v29 = vadd.f32 %v1978_v19, %v4455_v6 }
 0x221   : > { %v1980_v0 = vpop.f32.mrf.mxu0 }
 0x222   : > { %v720_v16 = vpop.permute.xlu1 %719  ;;  %v1981_v47 = vadd.f32 %v1980_v0, %v4450_v28 }
 0x223   : > { %vm738_vm7 = vcmp.eq.s32.totalorder %v4131_v36, %v720_v16  ;;  %v1982_v4 = vpop.f32.mrf.mxu0 }
 0x224   : > { %v1983_v40 = vadd.f32 %v1982_v4, %v4455_v6 }
 0x226   : > { %v723_v23 = vpop.permute.xlu1 %722 }
 0x227   : > { %vm739_vm8 = vcmp.eq.s32.totalorder %v4131_v36, %v723_v23 }
 0x228   : > { %vm3227_vm9 = vmpackc.low %vm739_vm8, %vm738_vm7 }
 0x229   : > { %3228 = vmatmul.mubr.msk.bf16.gmra.mxu0 %vm3227_vm9, %v3891_v18 }
 0x22b   : > { %v1035_v61 = vpop.permute.xlu1 %1034  ;;  %v2089_v31 = vpop.f32.mrf.mxu1 }
 0x22c   : > { %vm1051_vm11 = vcmp.eq.s32.totalorder %v4131_v36, %v1035_v61  ;;  %v4663_v37 = vadd.f32 %v2089_v31, %v1977_v27 }
 0x22d   : > { %vm3257_vm12 = vmpackc.low %vm1051_vm11, %vm1050_vm10  ;;  %v2091_v39 = vpop.f32.mrf.mxu1 }
 0x22e   : > { %v4666_v48 = vadd.f32 %v2091_v39, %v1979_v29  ;;  %3258 = vmatprep.mubr.msk.bf16.mxu1 %vm3257_vm12, %v3891_v18 }
 0x22f   : > { %v2093_v59 = vpop.f32.mrf.mxu1 }
 0x230   : > { %v4671_v46 = vadd.f32 %v2093_v59, %v1981_v47  ;;  %v928_v50 = vpop.permute.xlu1 %927 }
 0x231   : > { %vm946_vm14 = vcmp.eq.s32.totalorder %v4131_v36, %v928_v50  ;;  %v2095_v43 = vpop.f32.mrf.mxu1 }
 0x232   : > { %vm3259_vm15 = vmpackc.low %vm947_vm13, %vm946_vm14  ;;  %v4674_v42 = vadd.f32 %v2095_v43, %v1983_v40 }
 0x233   : > { %3260 = vmatmul.mubr.msk.bf16.gmra.mxu1 %vm3259_vm15, %v3891_v18 }
 0x235   : > { %v2132_v41 = vpop.f32.mrf.mxu0 }
 0x236   : > { %v2133_v18 = vadd.f32 %v2132_v41, %v4461_v63 }
 0x237   : > { %v2134_v33 = vpop.f32.mrf.mxu0 }
 0x238   : > { %v2135_v16 = vadd.f32 %v2134_v33, %v4465_v57 }
 0x239   : > { %v2136_v55 = vpop.f32.mrf.mxu0 }
 0x23a   : > { %v2137_v19 = vadd.f32 %v2136_v55, %v2024_v56 }
 0x23b   : > { %v2138_v7 = vpop.f32.mrf.mxu0 }
 0x23c   : > { %v2139_v24 = vadd.f32 %v2138_v7, %v2026_v9 }
 0x243   : > { %v2245_v12 = vpop.f32.mrf.mxu1 }
 0x244   : > { %v2246_v44 = vadd.f32 %v2245_v12, %v2133_v18 }
 0x245   : > { %v2247_v36 = vpop.f32.mrf.mxu1 }
 0x246   : > { %v2248_v0 = vadd.f32 %v2247_v36, %v2135_v16  ;;  %v2324_v15 = vmax.f32 %v2246_v44, 0.0 }
 0x247   : > { %v2249_v23 = vpop.f32.mrf.mxu1 }
 0x248   : > { %v2250_v27 = vadd.f32 %v2249_v23, %v2137_v19  ;;  %v2325_v10 = vmax.f32 %v2248_v0, 0.0 }
 0x249   : > { %v2251_v28 = vpop.f32.mrf.mxu1 }
 0x24a   : > { %v2252_v61 = vadd.f32 %v2251_v28, %v2139_v24  ;;  %v2326_v31 = vmax.f32 %v2250_v27, 0.0 }
 0x24c   : > { %v2327_v6 = vmax.f32 %v2252_v61, 0.0  ;;  %v2356_v1 = vpack.c.bf16 %v2326_v31, %v2324_v15 }
 0x24e   : > { %v2357_v29 = vpack.c.bf16 %v2327_v6, %v2325_v10 }
 0x250   : > { %2539 = vmatprep.mubr.bf16.mxu0 %v2357_v29 }
 0x251   : > { %v2142_v5 = vpop.f32.mrf.mxu0  ;;  %2540 = vmatmul.mubr.bf16.vlgmr.msra.gmra.mxu0 %v2356_v1 }
 0x252   : > { %v2143_v63 = vadd.f32 %v2142_v5, %v4488_v32 }
 0x253   : > { %v2144_v57 = vpop.f32.mrf.mxu0 }
 0x254   : > { %v2145_v40 = vadd.f32 %v2144_v57, %v4493_v20 }
 0x255   : > { %v2146_v4 = vpop.f32.mrf.mxu0 }
 0x256   : > { %v2147_v50 = vadd.f32 %v2146_v4, %v4504_v26 }
 0x257   : > { %v2148_v47 = vpop.f32.mrf.mxu0 }
 0x258   : > { %v2149_v33 = vadd.f32 %v2148_v47, %v4519_v45 }
 0x25b   : > { %v2255_v39 = vpop.f32.mrf.mxu1 }
 0x25c   : > { %v2256_v43 = vadd.f32 %v2255_v39, %v2143_v63 }
 0x25d   : > { %v2257_v59 = vpop.f32.mrf.mxu1 }
 0x25e   : > { %v2258_v55 = vadd.f32 %v2257_v59, %v2145_v40  ;;  %v2328_v8 = vmax.f32 %v2256_v43, 0.0 }
 0x25f   : > { %v2259_v41 = vpop.f32.mrf.mxu1 }
 0x260   : > { %v2260_v58 = vadd.f32 %v2259_v41, %v2147_v50  ;;  %v2329_v36 = vmax.f32 %v2258_v55, 0.0 }
 0x261   : > { %v2261_v12 = vpop.f32.mrf.mxu1 }
 0x262   : > { %v2330_v56 = vmax.f32 %v2260_v58, 0.0  ;;  %v2262_v7 = vadd.f32 %v2261_v12, %v2149_v33 }
 0x264   : > { %v2358_v9 = vpack.c.bf16 %v2330_v56, %v2328_v8  ;;  %v2331_v16 = vmax.f32 %v2262_v7, 0.0 }
 0x266   : > { %v2359_v32 = vpack.c.bf16 %v2331_v16, %v2329_v36 }
 0x268   : > { %2547 = vmatprep.mubr.bf16.mxu0 %v2359_v32 }
 0x269   : > { %2548 = vmatmul.mubr.bf16.gmra.mxu0 %v2358_v9  ;;  %v2152_v19 = vpop.f32.mrf.mxu0 }
 0x26a   : > { %v2153_v23 = vadd.f32 %v2152_v19, %v4523_v14 }
 0x26b   : > { %v2154_v20 = vpop.f32.mrf.mxu0 }
 0x26c   : > { %v2155_v0 = vadd.f32 %v2154_v20, %v4530_v2 }
 0x26d   : > { %v2156_v18 = vpop.f32.mrf.mxu0 }
 0x26e   : > { %v2157_v27 = vadd.f32 %v2156_v18, %v4536_v52 }
 0x26f   : > { %v2158_v24 = vpop.f32.mrf.mxu0 }
 0x270   : > { %v2159_v61 = vadd.f32 %v2158_v24, %v4542_v11 }
 0x277   : > { %v2265_v26 = vpop.f32.mrf.mxu1 }
 0x278   : > { %v2266_v44 = vadd.f32 %v2265_v26, %v2153_v23 }
 0x279   : > { %v2267_v45 = vpop.f32.mrf.mxu1 }
 0x27a   : > { %v2268_v31 = vadd.f32 %v2267_v45, %v2155_v0  ;;  %v2332_v15 = vmax.f32 %v2266_v44, 0.0 }
 0x27b   : > { %v2269_v28 = vpop.f32.mrf.mxu1 }
 0x27c   : > { %v2270_v10 = vadd.f32 %v2269_v28, %v2157_v27  ;;  %v2333_v5 = vmax.f32 %v2268_v31, 0.0 }
 0x27d   : > { %v2271_v6 = vpop.f32.mrf.mxu1 }
 0x27e   : > { %v2334_v29 = vmax.f32 %v2270_v10, 0.0  ;;  %v2272_v1 = vadd.f32 %v2271_v6, %v2159_v61 }
 0x280   : > { %v2360_v57 = vpack.c.bf16 %v2334_v29, %v2332_v15  ;;  %v2335_v4 = vmax.f32 %v2272_v1, 0.0 }
 0x281   : > { %v2162_v39 = vpop.f32.mrf.mxu0 }
 0x282   : > { %v2361_v14 = vpack.c.bf16 %v2335_v4, %v2333_v5  ;;  %v2163_v47 = vadd.f32 %v2162_v39, %v4548_v62 }
 0x283   : > { %v2164_v2 = vpop.f32.mrf.mxu0 }
 0x284   : > { %2555 = vmatprep.mubr.bf16.mxu0 %v2361_v14  ;;  %v2165_v40 = vadd.f32 %v2164_v2, %v4556_v13 }
 0x285   : > { %2556 = vmatmul.mubr.bf16.gmra.mxu0 %v2360_v57  ;;  %v2166_v63 = vpop.f32.mrf.mxu0 }
 0x286   : > { %v2167_v50 = vadd.f32 %v2166_v63, %v4563_v60 }
 0x287   : > { %v2168_v59 = vpop.f32.mrf.mxu0 }
 0x288   : > { %v2169_v33 = vadd.f32 %v2168_v59, %v4569_v25 }
 0x28f   : > { %v2275_v52 = vpop.f32.mrf.mxu1 }
 0x290   : > { %v2276_v43 = vadd.f32 %v2275_v52, %v2163_v47 }
 0x291   : > { %v2277_v11 = vpop.f32.mrf.mxu1 }
 0x292   : > { %v2278_v55 = vadd.f32 %v2277_v11, %v2165_v40  ;;  %v2336_v8 = vmax.f32 %v2276_v43, 0.0 }
 0x293   : > { %v2279_v41 = vpop.f32.mrf.mxu1 }
 0x294   : > { %v2280_v58 = vadd.f32 %v2279_v41, %v2167_v50  ;;  %v2337_v36 = vmax.f32 %v2278_v55, 0.0 }
 0x295   : > { %v2281_v12 = vpop.f32.mrf.mxu1 }
 0x296   : > { %v2338_v56 = vmax.f32 %v2280_v58, 0.0  ;;  %v2282_v7 = vadd.f32 %v2281_v12, %v2169_v33 }
 0x298   : > { %v2362_v9 = vpack.c.bf16 %v2338_v56, %v2336_v8  ;;  %v2339_v16 = vmax.f32 %v2282_v7, 0.0 }
 0x29a   : > { %v2363_v62 = vpack.c.bf16 %v2339_v16, %v2337_v36 }
 0x29c   : > { %2563 = vmatprep.mubr.bf16.mxu0 %v2363_v62 }
 0x29d   : > { %v2172_v32 = vpop.f32.mrf.mxu0  ;;  %2564 = vmatmul.mubr.bf16.gmra.mxu0 %v2362_v9 }
 0x29e   : > { %v2173_v20 = vadd.f32 %v2172_v32, %v4588_v49 }
 0x29f   : > { %v2174_v13 = vpop.f32.mrf.mxu0 }
 0x2a0   : > { %v2175_v26 = vadd.f32 %v2174_v13, %v4591_v51 }
 0x2a1   : > { %v2176_v19 = vpop.f32.mrf.mxu0 }
 0x2a2   : > { %v2177_v23 = vadd.f32 %v2176_v19, %v4596_v22 }
 0x2a3   : > { %v2178_v18 = vpop.f32.mrf.mxu0 }
 0x2a4   : > { %v2179_v0 = vadd.f32 %v2178_v18, %v4599_v53 }
 0x2a7   : > { %v2285_v60 = vpop.f32.mrf.mxu1 }
 0x2a8   : > { %v2286_v24 = vadd.f32 %v2285_v60, %v2173_v20 }
 0x2a9   : > { %v2287_v25 = vpop.f32.mrf.mxu1 }
 0x2aa   : > { %v2288_v27 = vadd.f32 %v2287_v25, %v2175_v26  ;;  %v2340_v61 = vmax.f32 %v2286_v24, 0.0 }
 0x2ab   : > { %v2289_v45 = vpop.f32.mrf.mxu1 }
 0x2ac   : > { %v2290_v44 = vadd.f32 %v2289_v45, %v2177_v23  ;;  %v2341_v6 = vmax.f32 %v2288_v27, 0.0 }
 0x2ad   : > { %v2291_v28 = vpop.f32.mrf.mxu1 }
 0x2ae   : > { %v2342_v31 = vmax.f32 %v2290_v44, 0.0  ;;  %v2292_v10 = vadd.f32 %v2291_v28, %v2179_v0 }
 0x2b0   : > { %v2364_v15 = vpack.c.bf16 %v2342_v31, %v2340_v61  ;;  %v2343_v29 = vmax.f32 %v2292_v10, 0.0 }
 0x2b2   : > { %v2365_v49 = vpack.c.bf16 %v2343_v29, %v2341_v6 }
 0x2b4   : > { %2571 = vmatprep.mubr.bf16.mxu1 %v2365_v49 }
 0x2b5   : > { %2572 = vmatmul.mubr.bf16.vlgmr.msra.gmra.mxu1 %v2364_v15  ;;  %v2182_v1 = vpop.f32.mrf.mxu0 }
 0x2b6   : > { %v2183_v57 = vadd.f32 %v2182_v1, %v4614_v30 }
 0x2b7   : > { %v2184_v51 = vpop.f32.mrf.mxu0 }
 0x2b8   : > { %v2185_v14 = vadd.f32 %v2184_v51, %v4617_v21 }
 0x2b9   : > { %v2186_v5 = vpop.f32.mrf.mxu0 }
 0x2ba   : > { %v2187_v39 = vadd.f32 %v2186_v5, %v4621_v17 }
 0x2bb   : > { %v2188_v4 = vpop.f32.mrf.mxu0 }
 0x2bc   : > { %v2189_v52 = vadd.f32 %v2188_v4, %v4623_v35 }
 0x2c3   : > { %v2295_v22 = vpop.f32.mrf.mxu1 }
 0x2c4   : > { %v2296_v2 = vadd.f32 %v2295_v22, %v2183_v57 }
 0x2c5   : > { %v2297_v53 = vpop.f32.mrf.mxu1 }
 0x2c6   : > { %v2298_v47 = vadd.f32 %v2297_v53, %v2185_v14  ;;  %v2344_v40 = vmax.f32 %v2296_v2, 0.0 }
 0x2c7   : > { %v2299_v63 = vpop.f32.mrf.mxu1 }
 0x2c8   : > { %v2300_v59 = vadd.f32 %v2299_v63, %v2187_v39  ;;  %v2345_v41 = vmax.f32 %v2298_v47, 0.0 }
 0x2c9   : > { %v2301_v11 = vpop.f32.mrf.mxu1 }
 0x2ca   : > { %v2346_v50 = vmax.f32 %v2300_v59, 0.0  ;;  %v2302_v43 = vadd.f32 %v2301_v11, %v2189_v52 }
 0x2cc   : > { %v2366_v33 = vpack.c.bf16 %v2346_v50, %v2344_v40  ;;  %v2347_v55 = vmax.f32 %v2302_v43, 0.0 }
 0x2cd   : > { %v2192_v58 = vpop.f32.mrf.mxu0 }
 0x2ce   : > { %v2367_v30 = vpack.c.bf16 %v2347_v55, %v2345_v41  ;;  %v2193_v8 = vadd.f32 %v2192_v58, %v4637_v38 }
 0x2cf   : > { %v2194_v21 = vpop.f32.mrf.mxu0 }
 0x2d0   : > { %2579 = vmatprep.mubr.bf16.mxu1 %v2367_v30  ;;  %v2195_v7 = vadd.f32 %v2194_v21, %v4640_v54 }
 0x2d1   : > { %2580 = vmatmul.mubr.bf16.gmra.mxu1 %v2366_v33  ;;  %v2196_v12 = vpop.f32.mrf.mxu0 }
 0x2d2   : > { %v2197_v36 = vadd.f32 %v2196_v12, %v4645_v3 }
 0x2d3   : > { %v2198_v56 = vpop.f32.mrf.mxu0 }
 0x2d4   : > { %v2199_v62 = vadd.f32 %v2198_v56, %v4647_v34 }
 0x2db   : > { %v2305_v17 = vpop.f32.mrf.mxu1 }
 0x2dc   : > { %v2306_v9 = vadd.f32 %v2305_v17, %v2193_v8 }
 0x2dd   : > { %v2307_v35 = vpop.f32.mrf.mxu1 }
 0x2de   : > { %v2308_v32 = vadd.f32 %v2307_v35, %v2195_v7  ;;  %v2348_v60 = vmax.f32 %v2306_v9, 0.0 }
 0x2df   : > { %v2309_v16 = vpop.f32.mrf.mxu1 }
 0x2e0   : > { %v2310_v13 = vadd.f32 %v2309_v16, %v2197_v36  ;;  %v2349_v25 = vmax.f32 %v2308_v32, 0.0 }
 0x2e1   : > { %v2311_v19 = vpop.f32.mrf.mxu1 }
 0x2e2   : > { %v2350_v20 = vmax.f32 %v2310_v13, 0.0  ;;  %v2312_v18 = vadd.f32 %v2311_v19, %v2199_v62 }
 0x2e4   : > { %v2368_v26 = vpack.c.bf16 %v2350_v20, %v2348_v60  ;;  %v2351_v23 = vmax.f32 %v2312_v18, 0.0 }
 0x2e6   : > { %v2369_v38 = vpack.c.bf16 %v2351_v23, %v2349_v25 }
 0x2e8   : > { %2587 = vmatprep.mubr.bf16.mxu1 %v2369_v38 }
 0x2e9   : > { %v2202_v24 = vpop.f32.mrf.mxu0  ;;  %2588 = vmatmul.mubr.bf16.gmra.mxu1 %v2368_v26 }
 0x2ea   : > { %v2203_v0 = vadd.f32 %v2202_v24, %v4663_v37 }
 0x2eb   : > { %v2204_v54 = vpop.f32.mrf.mxu0 }
 0x2ec   : > { %v2205_v44 = vadd.f32 %v2204_v54, %v4666_v48  ;;  %v4716_v48 = vld [vmem:[%s4934_s4] ss:$0 sm:$0xff] }
 0x2ed   : > { %v2206_v45 = vpop.f32.mrf.mxu0 }
 0x2ee   : > { %v2207_v28 = vadd.f32 %v2206_v45, %v4671_v46 }
 0x2ef   : > { %v2208_v27 = vpop.f32.mrf.mxu0 }
 0x2f0   : > { %v2209_v10 = vadd.f32 %v2208_v27, %v4674_v42 }
 0x2f3   : > { %v2315_v3 = vpop.f32.mrf.mxu1 }
 0x2f4   : > { %v2316_v61 = vadd.f32 %v2315_v3, %v2203_v0 }
 0x2f5   : > { %v2317_v34 = vpop.f32.mrf.mxu1 }
 0x2f6   : > { %v2318_v6 = vadd.f32 %v2317_v34, %v2205_v44  ;;  %v2352_v49 = vmax.f32 %v2316_v61, 0.0 }
 0x2f7   : > { %v2319_v31 = vpop.f32.mrf.mxu1 }
 0x2f8   : > { %v2320_v15 = vadd.f32 %v2319_v31, %v2207_v28  ;;  %v2353_v5 = vmax.f32 %v2318_v6, 0.0 }
 0x2f9   : > { %v2321_v29 = vpop.f32.mrf.mxu1 }
 0x2fa   : > { %v2354_v1 = vmax.f32 %v2320_v15, 0.0  ;;  %v2322_v51 = vadd.f32 %v2321_v29, %v2209_v10 }
 0x2fc   : > { %v2370_v22 = vpack.c.bf16 %v2354_v1, %v2352_v49  ;;  %v2355_v57 = vmax.f32 %v2322_v51, 0.0 }
 0x2fe   : > { %v2371_v37 = vpack.c.bf16 %v2355_v57, %v2353_v5 }
 0x300   : > { %2595 = vmatprep.mubr.bf16.mxu1 %v2371_v37 }
 0x301   : > { %2596 = vmatmul.mubr.bf16.gmra.mxu1 %v2370_v22 }
 0x311   : > { %v3300_v4 = vpop.f32.mrf.mxu0 }
 0x313   : > { %v3301_v46 = vpop.f32.mrf.mxu0 }
 0x314   : > { %v3302_v42 = vadd.f32 %v3301_v46, %v3300_v4 }
 0x315   : > { %v3303_v53 = vpop.f32.mrf.mxu0 }
 0x316   : > { %v4719_v14 = vadd.f32 %v3302_v42, %v4716_v48 }
 0x317   : > { %v3304_v39 = vpop.f32.mrf.mxu0 }
 0x318   : > { %v3305_v2 = vadd.f32 %v3304_v39, %v3303_v53  ;;  %2604 = vmax.xlane.f32.xlu1 %v4719_v14 }
 0x31a   : > { %v4723_v63 = vadd.f32 %v3305_v2, %v4716_v48 }
 0x31c   : > { %2606 = vmax.xlane.f32.xlu0 %v4723_v63 }
 0x329   : > { %v3306_v52 = vpop.f32.mrf.mxu0 }
 0x32b   : > { %v3307_v47 = vpop.f32.mrf.mxu0 }
 0x32c   : > { %v3308_v59 = vadd.f32 %v3307_v47, %v3306_v52 }
 0x32d   : > { %v3309_v11 = vpop.f32.mrf.mxu0 }
 0x32e   : > { %v2550_v40 = vadd.f32 %v3308_v59, %v4716_v48 }
 0x32f   : > { %v3310_v50 = vpop.f32.mrf.mxu0 }
 0x330   : > { %v3311_v43 = vadd.f32 %v3310_v50, %v3309_v11  ;;  %2608 = vmax.xlane.f32.xlu1 %v2550_v40 }
 0x332   : > { %v4728_v41 = vadd.f32 %v3311_v43, %v4716_v48 }
 0x334   : > { %2610 = vmax.xlane.f32.xlu0 %v4728_v41 }
 0x345   : > { %v3312_v33 = vpop.f32.mrf.mxu0 }
 0x347   : > { %v3313_v55 = vpop.f32.mrf.mxu0 }
 0x348   : > { %v3314_v30 = vadd.f32 %v3313_v55, %v3312_v33 }
 0x349   : > { %v3315_v58 = vpop.f32.mrf.mxu0 }
 0x34a   : > { %v4732_v21 = vadd.f32 %v3314_v30, %v4716_v48 }
 0x34b   : > { %v3316_v12 = vpop.f32.mrf.mxu0 }
 0x34c   : > { %v3317_v17 = vadd.f32 %v3316_v12, %v3315_v58  ;;  %2612 = vmax.xlane.f32.xlu1 %v4732_v21 }
 0x34e   : > { %v4736_v8 = vadd.f32 %v3317_v17, %v4716_v48 }
 0x350   : > { %2614 = vmax.xlane.f32.xlu0 %v4736_v8 }
 0x35d   : > { %v3318_v56 = vpop.f32.mrf.mxu0 }
 0x35f   : > { %v3319_v35 = vpop.f32.mrf.mxu0 }
 0x360   : > { %v3320_v7 = vadd.f32 %v3319_v35, %v3318_v56 }
 0x361   : > { %v3321_v36 = vpop.f32.mrf.mxu0 }
 0x362   : > { %v4740_v9 = vadd.f32 %v3320_v7, %v4716_v48 }
 0x363   : > { %v3322_v16 = vpop.f32.mrf.mxu0 }
 0x364   : > { %v3323_v62 = vadd.f32 %v3322_v16, %v3321_v36  ;;  %2616 = vmax.xlane.f32.xlu1 %v4740_v9 }
 0x366   : > { %v4744_v32 = vadd.f32 %v3323_v62, %v4716_v48 }
 0x368   : > { %2618 = vmax.xlane.f32.xlu0 %v4744_v32 }
 0x375   : > { %v3324_v13 = vpop.f32.mrf.mxu1 }
 0x377   : > { %v3325_v19 = vpop.f32.mrf.mxu1 }
 0x378   : > { %v3326_v60 = vadd.f32 %v3325_v19, %v3324_v13 }
 0x379   : > { %v3327_v20 = vpop.f32.mrf.mxu1 }
 0x37a   : > { %v4748_v18 = vadd.f32 %v3326_v60, %v4716_v48 }
 0x37b   : > { %v3328_v25 = vpop.f32.mrf.mxu1 }
 0x37c   : > { %v3329_v26 = vadd.f32 %v3328_v25, %v3327_v20  ;;  %2620 = vmax.xlane.f32.xlu1 %v4748_v18 }
 0x37e   : > { %v4752_v23 = vadd.f32 %v3329_v26, %v4716_v48 }
 0x380   : > { %2622 = vmax.xlane.f32.xlu0 %v4752_v23 }
 0x391   : > { %v3330_v38 = vpop.f32.mrf.mxu1 }
 0x393   : > { %v3331_v24 = vpop.f32.mrf.mxu1 }
 0x394   : > { %v3332_v54 = vadd.f32 %v3331_v24, %v3330_v38 }
 0x395   : > { %v3333_v45 = vpop.f32.mrf.mxu1 }
 0x396   : > { %v4756_v3 = vadd.f32 %v3332_v54, %v4716_v48 }
 0x397   : > { %v3334_v0 = vpop.f32.mrf.mxu1 }
 0x398   : > { %v3335_v27 = vadd.f32 %v3334_v0, %v3333_v45  ;;  %2624 = vmax.xlane.f32.xlu1 %v4756_v3 }
 0x39a   : > { %v4760_v34 = vadd.f32 %v3335_v27, %v4716_v48 }
 0x39c   : > { %2626 = vmax.xlane.f32.xlu0 %v4760_v34 }
 0x3a1   : > { %v2605_v49 = vpop.xlane.xlu1 %2604 }
 0x3a2   : > { %v4772_v1 = vsub.f32 %v4719_v14, %v2605_v49 }
 0x3a4   : > { %v2652_v57 = vmul.f32 1.442695, %v4772_v1 }
 0x3a5   : > { %v2607_v51 = vpop.xlane.xlu0 %2606 }
 0x3a6   : > { %v4775_v5 = vsub.f32 %v4723_v63, %v2607_v51  ;;  %3711 = vpow2.f32 %v2652_v57 }
 0x3a8   : > { %v2654_v4 = vmul.f32 1.442695, %v4775_v5 }
 0x3a9   : > { %v3336_v44 = vpop.f32.mrf.mxu1 }
 0x3aa   : > { %3713 = vpow2.f32 %v2654_v4 }
 0x3ab   : > { %v3337_v28 = vpop.f32.mrf.mxu1 }
 0x3ac   : > { %v3338_v61 = vadd.f32 %v3337_v28, %v3336_v44 }
 0x3ad   : > { %v3339_v31 = vpop.f32.mrf.mxu1 }
 0x3ae   : > { %v4764_v10 = vadd.f32 %v3338_v61, %v4716_v48 }
 0x3af   : > { %v3340_v6 = vpop.f32.mrf.mxu1 }
 0x3b0   : > { %v3341_v15 = vadd.f32 %v3340_v6, %v3339_v31  ;;  %2628 = vmax.xlane.f32.xlu1 %v4764_v10 }
 0x3b2   : > { %v4768_v29 = vadd.f32 %v3341_v15, %v4716_v48 }
 0x3b3   : > { %v3712_v50 = vpop.eup %3711 }
 0x3b4   : > { %2630 = vmax.xlane.f32.xlu0 %v4768_v29 }
 0x3b7   : > { %v3714_v43 = vpop.eup %3713 }
 0x3b9   : > { %v2609_v22 = vpop.xlane.xlu1 %2608 }
 0x3ba   : > { %v4778_v37 = vsub.f32 %v2550_v40, %v2609_v22 }
 0x3bc   : > { %v2656_v42 = vmul.f32 1.442695, %v4778_v37 }
 0x3bd   : > { %v2611_v46 = vpop.xlane.xlu0 %2610 }
 0x3be   : > { %v4783_v53 = vsub.f32 %v4728_v41, %v2611_v46  ;;  %3715 = vpow2.f32 %v2656_v42 }
 0x3c0   : > { %v2658_v39 = vmul.f32 1.442695, %v4783_v53 }
 0x3c1   : > { %v3342_v14 = vpop.f32.mrf.mxu1 }
 0x3c2   : > { %3717 = vpow2.f32 %v2658_v39 }
 0x3c3   : > { %v3343_v2 = vpop.f32.mrf.mxu1 }
 0x3c4   : > { %v3344_v63 = vadd.f32 %v3343_v2, %v3342_v14 }
 0x3c5   : > { %v3345_v52 = vpop.f32.mrf.mxu1 }
 0x3c6   : > { %v4787_v47 = vadd.f32 %v3344_v63, %v4716_v48 }
 0x3c7   : > { %v3346_v59 = vpop.f32.mrf.mxu1 }
 0x3c8   : > { %v3347_v11 = vadd.f32 %v3346_v59, %v3345_v52  ;;  %2632 = vmax.xlane.f32.xlu1 %v4787_v47 }
 0x3ca   : > { %v4791_v40 = vadd.f32 %v3347_v11, %v4716_v48 }
 0x3cb   : > { %v3716_v41 = vpop.eup %3715 }
 0x3cc   : > { %2634 = vmax.xlane.f32.xlu0 %v4791_v40  ;;  %2684 = vadd.xlane.f32.xlu1 %v3712_v50 }
 0x3cf   : > { %v3718_v33 = vpop.eup %3717 }
 0x3d0   : > { %2688 = vadd.xlane.f32.xlu1 %v3716_v41  ;;  %2686 = vadd.xlane.f32.xlu0 %v3714_v43 }
 0x3d4   : > { %2690 = vadd.xlane.f32.xlu0 %v3718_v33 }
 0x3d5   : > { %v2613_v55 = vpop.xlane.xlu1 %2612 }
 0x3d6   : > { %v4795_v30 = vsub.f32 %v4732_v21, %v2613_v55 }
 0x3d8   : > { %v2660_v58 = vmul.f32 1.442695, %v4795_v30 }
 0x3d9   : > { %v2615_v12 = vpop.xlane.xlu0 %2614 }
 0x3da   : > { %3719 = vpow2.f32 %v2660_v58  ;;  %v4799_v48 = vsub.f32 %v4736_v8, %v2615_v12 }
 0x3dc   : > { %v2662_v17 = vmul.f32 1.442695, %v4799_v48 }
 0x3de   : > { %3721 = vpow2.f32 %v2662_v17 }
 0x3e7   : > { %v3720_v56 = vpop.eup %3719 }
 0x3e8   : > { %2692 = vadd.xlane.f32.xlu1 %v3720_v56 }
 0x3eb   : > { %v3722_v35 = vpop.eup %3721 }
 0x3ec   : > { %2694 = vadd.xlane.f32.xlu0 %v3722_v35 }
 0x3ed   : > { %v2617_v7 = vpop.xlane.xlu1 %2616 }
 0x3ee   : > { %v4803_v36 = vsub.f32 %v4740_v9, %v2617_v7 }
 0x3f0   : > { %v2664_v21 = vmul.f32 1.442695, %v4803_v36 }
 0x3f1   : > { %v2619_v16 = vpop.xlane.xlu0 %2618 }
 0x3f2   : > { %3723 = vpow2.f32 %v2664_v21  ;;  %v4807_v62 = vsub.f32 %v4744_v32, %v2619_v16 }
 0x3f4   : > { %v2666_v8 = vmul.f32 1.442695, %v4807_v62 }
 0x3f6   : > { %3725 = vpow2.f32 %v2666_v8 }
 0x3ff   : > { %v3724_v13 = vpop.eup %3723 }
 0x400   : > { %2696 = vadd.xlane.f32.xlu1 %v3724_v13 }
 0x403   : > { %v3726_v19 = vpop.eup %3725 }
 0x404   : > { %2698 = vadd.xlane.f32.xlu0 %v3726_v19 }
 0x405   : > { %v2621_v60 = vpop.xlane.xlu1 %2620 }
 0x406   : > { %v4811_v20 = vsub.f32 %v4748_v18, %v2621_v60 }
 0x408   : > { %v2668_v9 = vmul.f32 1.442695, %v4811_v20 }
 0x409   : > { %v2623_v25 = vpop.xlane.xlu0 %2622 }
 0x40a   : > { %3727 = vpow2.f32 %v2668_v9  ;;  %v4815_v26 = vsub.f32 %v4752_v23, %v2623_v25 }
 0x40c   : > { %v2670_v32 = vmul.f32 1.442695, %v4815_v26 }
 0x40e   : > { %3729 = vpow2.f32 %v2670_v32 }
 0x417   : > { %v3728_v38 = vpop.eup %3727 }
 0x418   : > { %2700 = vadd.xlane.f32.xlu1 %v3728_v38 }
 0x41b   : > { %v3730_v24 = vpop.eup %3729 }
 0x41c   : > { %2702 = vadd.xlane.f32.xlu0 %v3730_v24 }
 0x421   : > { %v2625_v54 = vpop.xlane.xlu1 %2624 }
 0x422   : > { %v4819_v45 = vsub.f32 %v4756_v3, %v2625_v54 }
 0x424   : > { %v2672_v18 = vmul.f32 1.442695, %v4819_v45 }
 0x425   : > { %v2627_v0 = vpop.xlane.xlu0 %2626 }
 0x426   : > { %3731 = vpow2.f32 %v2672_v18  ;;  %v4823_v27 = vsub.f32 %v4760_v34, %v2627_v0 }
 0x428   : > { %v2674_v23 = vmul.f32 1.442695, %v4823_v27 }
 0x42a   : > { %3733 = vpow2.f32 %v2674_v23 }
 0x433   : > { %v3732_v44 = vpop.eup %3731 }
 0x434   : > { %2704 = vadd.xlane.f32.xlu1 %v3732_v44 }
 0x437   : > { %v3734_v28 = vpop.eup %3733 }
 0x438   : > { %2706 = vadd.xlane.f32.xlu0 %v3734_v28 }
 0x439   : > { %v2629_v61 = vpop.xlane.xlu1 %2628 }
 0x43a   : > { %v4827_v31 = vsub.f32 %v4764_v10, %v2629_v61 }
 0x43c   : > { %v2676_v3 = vmul.f32 1.442695, %v4827_v31 }
 0x43d   : > { %v2631_v6 = vpop.xlane.xlu0 %2630 }
 0x43e   : > { %3735 = vpow2.f32 %v2676_v3  ;;  %v4831_v15 = vsub.f32 %v4768_v29, %v2631_v6 }
 0x440   : > { %v2678_v34 = vmul.f32 1.442695, %v4831_v15 }
 0x442   : > { %3737 = vpow2.f32 %v2678_v34 }
 0x44b   : > { %v3736_v49 = vpop.eup %3735 }
 0x44c   : > { %2708 = vadd.xlane.f32.xlu1 %v3736_v49 }
 0x44f   : > { %v3738_v51 = vpop.eup %3737 }
 0x450   : > { %2710 = vadd.xlane.f32.xlu0 %v3738_v51 }
 0x451   : > { %v2633_v22 = vpop.xlane.xlu1 %2632 }
 0x452   : > { %v4835_v57 = vsub.f32 %v4787_v47, %v2633_v22 }
 0x454   : > { %v2680_v10 = vmul.f32 1.442695, %v4835_v57 }
 0x455   : > { %v2685_v4 = vpop.xlane.xlu1 %2684  ;;  %v2635_v46 = vpop.xlane.xlu0 %2634 }
 0x456   : > { %3739 = vpow2.f32 %v2680_v10  ;;  %v4839_v29 = vsub.f32 %v4791_v40, %v2635_v46 }
 0x457   : > { %3741 = vlog2.f32 %v2685_v4 }
 0x458   : > { %v2682_v42 = vmul.f32 1.442695, %v4839_v29 }
 0x459   : > { %v2689_v14 = vpop.xlane.xlu1 %2688  ;;  %v2687_v39 = vpop.xlane.xlu0 %2686 }
 0x45a   : > { %3743 = vpow2.f32 %v2682_v42 }
 0x45b   : > { %3745 = vlog2.f32 %v2689_v14 }
 0x45c   : > { %3747 = vlog2.f32 %v2687_v39 }
 0x45d   : > { %v2691_v2 = vpop.xlane.xlu0 %2690 }
 0x45e   : > { %3749 = vlog2.f32 %v2691_v2 }
 0x463   : > { %v3740_v63 = vpop.eup %3739 }
 0x464   : > { %v3742_v52 = vpop.eup %3741  ;;  %2712 = vadd.xlane.f32.xlu1 %v3740_v63 }
 0x465   : > { %v2717_v47 = vmul.f32 0.6931472, %v3742_v52 }
 0x467   : > { %v3744_v59 = vpop.eup %3743  ;;  %v2748_v11 = vsub.f32 %v4772_v1, %v2717_v47 }
 0x468   : > { %v3746_v40 = vpop.eup %3745  ;;  %2714 = vadd.xlane.f32.xlu0 %v3744_v59 }
 0x469   : > { %v3748_v50 = vpop.eup %3747  ;;  %2764 = vst [vmem:[%s4846_s8] sm:$0xff] %v2748_v11  ;;  %v2721_v43 = vmul.f32 0.6931472, %v3746_v40 }
 0x46a   : > { %v2719_v41 = vmul.f32 0.6931472, %v3748_v50 }
 0x46b   : > { %v3750_v33 = vpop.eup %3749  ;;  %v2750_v55 = vsub.f32 %v4778_v37, %v2721_v43 }
 0x46c   : > { %v2749_v58 = vsub.f32 %v4775_v5, %v2719_v41  ;;  %v2723_v12 = vmul.f32 0.6931472, %v3750_v33 }
 0x46d   : > { %2766 = vst [vmem:[%s4846_s8 + $0x10] sm:$0xff] %v2750_v55 }
 0x46e   : > { %2765 = vst [vmem:[%s4846_s8 + $0x8] sm:$0xff] %v2749_v58  ;;  %v2751_v1 = vsub.f32 %v4783_v53, %v2723_v12 }
 0x470   : > { %2767 = vst [vmem:[%s4846_s8 + $0x18] sm:$0xff] %v2751_v1 }
 0x471   : > { %v2693_v17 = vpop.xlane.xlu1 %2692 }
 0x472   : > { %3751 = vlog2.f32 %v2693_v17 }
 0x475   : > { %v2695_v56 = vpop.xlane.xlu0 %2694 }
 0x476   : > { %3753 = vlog2.f32 %v2695_v56 }
 0x47f   : > { %v3752_v35 = vpop.eup %3751 }
 0x480   : > { %v2725_v7 = vmul.f32 0.6931472, %v3752_v35 }
 0x482   : > { %v2752_v21 = vsub.f32 %v4795_v30, %v2725_v7 }
 0x483   : > { %v3754_v16 = vpop.eup %3753 }
 0x484   : > { %2768 = vst [vmem:[%s4846_s8 + $0x20] sm:$0xff] %v2752_v21  ;;  %v2727_v5 = vmul.f32 0.6931472, %v3754_v16 }
 0x486   : > { %v2753_v37 = vsub.f32 %v4799_v48, %v2727_v5 }
 0x488   : > { %2769 = vst [vmem:[%s4846_s8 + $0x28] sm:$0xff] %v2753_v37 }
 0x489   : > { %v2697_v8 = vpop.xlane.xlu1 %2696 }
 0x48a   : > { %3755 = vlog2.f32 %v2697_v8 }
 0x48d   : > { %v2699_v53 = vpop.xlane.xlu0 %2698 }
 0x48e   : > { %3757 = vlog2.f32 %v2699_v53 }
 0x497   : > { %v3756_v13 = vpop.eup %3755 }
 0x498   : > { %v2729_v19 = vmul.f32 0.6931472, %v3756_v13 }
 0x49a   : > { %v2754_v60 = vsub.f32 %v4803_v36, %v2729_v19 }
 0x49b   : > { %v3758_v9 = vpop.eup %3757 }
 0x49c   : > { %2770 = vst [vmem:[%s4846_s8 + $0x30] sm:$0xff] %v2754_v60  ;;  %v2731_v30 = vmul.f32 0.6931472, %v3758_v9 }
 0x49e   : > { %v2755_v25 = vsub.f32 %v4807_v62, %v2731_v30 }
 0x4a0   : > { %2771 = vst [vmem:[%s4846_s8 + $0x38] sm:$0xff] %v2755_v25 }
 0x4a1   : > { %v2701_v32 = vpop.xlane.xlu1 %2700 }
 0x4a2   : > { %3759 = vlog2.f32 %v2701_v32 }
 0x4a5   : > { %v2703_v48 = vpop.xlane.xlu0 %2702 }
 0x4a6   : > { %3761 = vlog2.f32 %v2703_v48 }
 0x4af   : > { %v3760_v38 = vpop.eup %3759 }
 0x4b0   : > { %v2733_v24 = vmul.f32 0.6931472, %v3760_v38 }
 0x4b2   : > { %v2756_v54 = vsub.f32 %v4811_v20, %v2733_v24 }
 0x4b3   : > { %v3762_v18 = vpop.eup %3761 }
 0x4b4   : > { %2772 = vst [vmem:[%s4846_s8 + $0x40] sm:$0xff] %v2756_v54  ;;  %v2735_v36 = vmul.f32 0.6931472, %v3762_v18 }
 0x4b6   : > { %v2757_v0 = vsub.f32 %v4815_v26, %v2735_v36 }
 0x4b8   : > { %2773 = vst [vmem:[%s4846_s8 + $0x48] sm:$0xff] %v2757_v0 }
 0x4bd   : > { %v2705_v23 = vpop.xlane.xlu1 %2704 }
 0x4be   : > { %3763 = vlog2.f32 %v2705_v23 }
 0x4c1   : > { %v2707_v62 = vpop.xlane.xlu0 %2706 }
 0x4c2   : > { %3765 = vlog2.f32 %v2707_v62 }
 0x4cb   : > { %v3764_v44 = vpop.eup %3763 }
 0x4cc   : > { %v2737_v28 = vmul.f32 0.6931472, %v3764_v44 }
 0x4ce   : > { %v2758_v61 = vsub.f32 %v4819_v45, %v2737_v28 }
 0x4cf   : > { %v3766_v3 = vpop.eup %3765 }
 0x4d0   : > { %2774 = vst [vmem:[%s4846_s8 + $0x50] sm:$0xff] %v2758_v61  ;;  %v2739_v20 = vmul.f32 0.6931472, %v3766_v3 }
 0x4d2   : > { %v2759_v6 = vsub.f32 %v4823_v27, %v2739_v20 }
 0x4d4   : > { %2775 = vst [vmem:[%s4846_s8 + $0x58] sm:$0xff] %v2759_v6 }
 0x4d5   : > { %v2709_v34 = vpop.xlane.xlu1 %2708 }
 0x4d6   : > { %3767 = vlog2.f32 %v2709_v34 }
 0x4d9   : > { %v2711_v26 = vpop.xlane.xlu0 %2710 }
 0x4da   : > { %3769 = vlog2.f32 %v2711_v26 }
 0x4e3   : > { %v3768_v49 = vpop.eup %3767 }
 0x4e4   : > { %v2741_v51 = vmul.f32 0.6931472, %v3768_v49 }
 0x4e6   : > { %v2760_v22 = vsub.f32 %v4827_v31, %v2741_v51 }
 0x4e7   : > { %v3770_v10 = vpop.eup %3769 }
 0x4e8   : > { %2776 = vst [vmem:[%s4846_s8 + $0x60] sm:$0xff] %v2760_v22  ;;  %v2743_v45 = vmul.f32 0.6931472, %v3770_v10 }
 0x4ea   : > { %v2761_v4 = vsub.f32 %v4831_v15, %v2743_v45 }
 0x4ec   : > { %2777 = vst [vmem:[%s4846_s8 + $0x68] sm:$0xff] %v2761_v4 }
 0x4ed   : > { %v2713_v27 = vpop.xlane.xlu1 %2712 }
 0x4ee   : > { %3771 = vlog2.f32 %v2713_v27 }
 0x4f1   : > { %v2715_v46 = vpop.xlane.xlu0 %2714 }
 0x4f2   : > { %3773 = vlog2.f32 %v2715_v46 }
 0x4fb   : > { %v3772_v42 = vpop.eup %3771 }
 0x4fc   : > { %v2745_v14 = vmul.f32 0.6931472, %v3772_v42 }
 0x4fe   : > { %v2762_v39 = vsub.f32 %v4835_v57, %v2745_v14 }
 0x4ff   : > { %v3774_v31 = vpop.eup %3773 }
 0x500   : > { %2778 = vst [vmem:[%s4846_s8 + $0x70] sm:$0xff] %v2762_v39  ;;  %v2747_v2 = vmul.f32 0.6931472, %v3774_v31 }
 0x502   : > { %v2763_v15 = vsub.f32 %v4839_v29, %v2747_v2 }
 0x504   : > { %2779 = vst [vmem:[%s4846_s8 + $0x78] sm:$0xff] %v2763_v15 }
 0x505   : > { %3828 = shalt.err (!%p3825_p0)
}
 0x506   : > { %s3829_s23 = scalar_lea.hbm %s4882_s13, 2048  ;;  %s3833_s30 = scalar_lea.hbm %s4935_s5, 4096 }
 0x507   : > { %p3830_p1 = scmp.ne.s32.totalorder %s4882_s13, %s3829_s23  ;;  %p3834_p4 = scmp.lt.s32.totalorder %s4882_s13, %s4935_s5 }
 0x508   : > { %p3835_p7 = scmp.lt.s32.totalorder %s3833_s30, %s3829_s23 }
 0x509   : > { %p3831_p2 = pnand %p3830_p1, %p3964_p5 }
 0x50a   : > { %p3836_p6 = por %p3835_p7, %p3834_p4 }
 0x50b   : > { %p3832_p3 = pneg %p3831_p2 }
 0x50d   : > { %p3837_p8 = pnand %p3836_p6, %p3832_p3 }
 0x50f   : > { %3840 = shalt.err (!%p3837_p8)
}
 0x510   : > { %s3894_s8 = smov 128   ;;  %s3895_s9 = smov 8  }
 0x511   : > { %3368 = dma.vmem_to_hbm [thread:$0]  (%p3964_p5), %s4884_s10, 2048, %s4882_s13, %s4890_s14, %s3894_s8, %s3894_s8, %s3895_s9  }
 0x512 PF: > { %p3380_p9 = scmp.ge.s32.totalorder %s3879_s21, 2  ;;  %s2809_s11 = sand.u32 1, %s3867_s18  }
 0x513   : > { %p4939_p10 = scmp.ne.s32.totalorder %s4937_s29, 0  ;;  %s2810_s12 = scalar_lea.sflag [#allocation4], %s2809_s11 }
 0x515   : > { %p3375_p11 = pnand %p3380_p9, %p4939_p10 }
 0x517   : > { %p3376_p12 = pneg %p3375_p11 }
 0x519   : > { %3862 = dma.done.wait (%p3376_p12), %s2810_s12, 2048  }
 0x51a   : > { %3864 = vsyncadd (%p3376_p12), %s2810_s12, 4294965248  ;;  %p16_p13 = scmp.ge.s32.totalorder %s3951_s24, 4   ;;  %s4940_s18 = smov %s3871_s19 }
 0x51b   : > { %s4941_s19 = smov %s3875_s20  ;;  %s4942_s20 = smov %s3962_s27 }
 0x51c   : > { %s4943_s21 = smov %s3951_s24  ;;  %18 = sbr.rel (!%p16_p13) target bundleno = 4 (0x4), region = 80 }
 0x521   :  { %2815 = vsyncpa [#allocation3], 1 }
 0x522   :  { %2817 = vsyncpa [#allocation3 + $0x1], 1 }
 0x523   :  { %2818 = vsyncpa [#allocation4], 1 }
 0x524   :  { %2820 = vsyncpa [#allocation4 + $0x1], 1 }

</bundles_post_ra>
